<compile_context>
chip_gen: v7x
topology: tpu7x:2x2x1
jax: 0.10.0
libtpu: 0.0.40
codegen_flags: <defaults>
</compile_context>

<pallas_src>
import jax
import jax.numpy as jnp
from jax import lax
from jax.experimental import pallas as pl
from jax.experimental.pallas import tpu as pltpu

NUM_CLASS = 5
C_FEAT = 1024
BN_EPS = 1e-5


def head_kernel(feat_ref, wt_ref, params_ref, out_ref):
    # feat_ref:   (H, B, W, C) f32 — C=1024 lane-dense, loop axis (H) first.
    # wt_ref:     (N, C)       f32 — fc1 weights pre-scaled by 1/HW, C on lanes.
    # params_ref: (3, N)       f32 — rows = (fc1 bias, bn gamma, bn beta).
    H, B, W, C = feat_ref.shape
    N = wt_ref.shape[0]

    # Global sum-pool over HxW, streamed one H-row at a time so live vregs stay
    # bounded (accumulator = 8 vregs, chunk = 16 vregs).  jnp.sum on the logical
    # (B, W, C) shape masks the W=7 -> 8 sublane padding correctly.
    def body(i, pooled):
        chunk = feat_ref[i]                      # (B, W, C), dynamic 1st-axis load
        return pooled + jnp.sum(chunk, axis=1)   # sublane (XLU) reduce -> (B, C)

    pooled = lax.fori_loop(0, H, body, jnp.zeros((B, C), jnp.float32),
                           unroll=True)

    # fc1 on the MXU: (B, C) x (N, C)^T, contraction on the lane axis.
    y = lax.dot_general(pooled, wt_ref[...],
                        (((1,), (1,)), ((), ())),
                        preferred_element_type=jnp.float32)  # (B, N)
    y = y + params_ref[0:1, :]                               # fc1 bias

    # BatchNorm1d (training mode): batch mean / biased batch variance.
    # (Degenerates to /sqrt(eps) for B=1, same as PyTorch train mode.)
    mu = jnp.mean(y, axis=0, keepdims=True)                  # (1, N)
    var = jnp.mean((y - mu) ** 2, axis=0, keepdims=True)     # (1, N)
    inv_std = lax.rsqrt(var + BN_EPS)
    out_ref[...] = (y - mu) * inv_std * params_ref[1:2, :] + params_ref[2:3, :]


def model_forward(feat_maps_nchw, w, b, gamma, beta):
    """feat_maps_nchw: (B, C=1024, H, W) float32 — backbone feature maps.

    w: (1024, num_class), b/gamma/beta: (num_class,).
    """
    B, C, H, W = feat_maps_nchw.shape
    assert C == C_FEAT
    HW = H * W

    # One-time XLA transpose to a channels-last, lane-dense layout (H, B, W, C).
    # Ideally the backbone emits channels-last directly and this vanishes; even
    # as a separate op it is cheaper than DMAing lane-sparse 196-byte rows into
    # the kernel (biggest win on v5e's slower HBM).
    feats = jnp.transpose(feat_maps_nchw, (2, 0, 3, 1))      # (H, B, W, C)

    # Fold the 1/HW pooling scale into the tiny weight matrix and pass it as
    # (N, C) so both its DMA rows and the fc contraction are lane-dense.
    wt = (w * (1.0 / HW)).T                                  # (NUM_CLASS, C)

    # Pack fc bias + BN gamma + BN beta into one (3, N) array: one tiny DMA.
    params = jnp.stack([b, gamma, beta], axis=0)             # (3, NUM_CLASS)

    cost = pl.CostEstimate(
        flops=B * HW * C + 2 * B * C * NUM_CLASS + 10 * B * NUM_CLASS,
        transcendentals=NUM_CLASS,
        bytes_accessed=(feats.size + wt.size + params.size + B * NUM_CLASS) * 4,
    )

    grid_spec = pl.GridSpec(
        grid=(1,),
        in_specs=[
            pl.BlockSpec((H, B, W, C), lambda i: (0, 0, 0, 0)),
            pl.BlockSpec((NUM_CLASS, C), lambda i: (0, 0)),
            pl.BlockSpec((3, NUM_CLASS), lambda i: (0, 0)),
        ],
        out_specs=pl.BlockSpec((B, NUM_CLASS), lambda i: (0, 0)),
    )

    return pl.pallas_call(
        head_kernel,
        grid_spec=grid_spec,
        out_shape=jax.ShapeDtypeStruct((B, NUM_CLASS), jnp.float32),
        compiler_params=pltpu.CompilerParams(
            dimension_semantics=("arbitrary",)),
        cost_estimate=cost,
    )(feats, wt, params)


def reference_forward(feat_maps_nchw, w, b, gamma, beta):
    pooled = jnp.mean(feat_maps_nchw, axis=(2, 3))           # (B, 1024)
    y = pooled @ w + b
    mu = jnp.mean(y, axis=0, keepdims=True)
    var = jnp.mean((y - mu) ** 2, axis=0, keepdims=True)
    return (y - mu) / jnp.sqrt(var + BN_EPS) * gamma + beta


if __name__ == "__main__":
    key = jax.random.PRNGKey(0)
    k_x, k_w, k_b = jax.random.split(key, 3)

    # Backbone feature maps (stand-in for GoogLeNet output before avgpool).
    B, H, W = 2, 7, 7
    x_feat_maps = jax.random.normal(k_x, (B, C_FEAT, H, W), jnp.float32)

    # fc1 params, PyTorch-style uniform(-1/sqrt(fan_in), 1/sqrt(fan_in)).
    bound = 1.0 / jnp.sqrt(jnp.float32(C_FEAT))
    w_fc1 = jax.random.uniform(k_w, (C_FEAT, NUM_CLASS), jnp.float32,
                               minval=-bound, maxval=bound)
    b_fc1 = jax.random.uniform(k_b, (NUM_CLASS,), jnp.float32,
                               minval=-bound, maxval=bound)
    # BatchNorm1d default init.
    gamma = jnp.ones((NUM_CLASS,), jnp.float32)
    beta = jnp.zeros((NUM_CLASS,), jnp.float32)

    out = model_forward(x_feat_maps, w_fc1, b_fc1, gamma, beta)
    out = jax.block_until_ready(out)

    ref = reference_forward(x_feat_maps, w_fc1, b_fc1, gamma, beta)
    assert out.shape == (B, NUM_CLASS)
    assert jnp.allclose(out, ref, atol=1e-4, rtol=1e-4), (out, ref)

    print("KERNEL_OK")
</pallas_src>

<mosaic_0001>
module attributes {stable_mosaic.version = 11 : i64} {
  func.func @head_kernel(%arg0: i32, %arg1: memref<7x2x7x1024xf32, #tpu.memory_space<vmem>>, %arg2: memref<5x1024xf32, #tpu.memory_space<vmem>>, %arg3: memref<3x5xf32, #tpu.memory_space<vmem>>, %arg4: memref<2x5xf32, #tpu.memory_space<vmem>>) attributes {dimension_semantics = [#tpu.dimension_semantics<arbitrary>], iteration_bounds = array<i64: 1>, scalar_prefetch = 0 : i64, scratch_operands = 0 : i64, tpu.core_type = #tpu.core_type<tc>, window_params = [{pipeline_mode = #tpu.pipeline_mode<synchronous>, transform_indices = @transform_0, window_bounds = array<i64: 7, 2, 7, 1024>}, {pipeline_mode = #tpu.pipeline_mode<synchronous>, transform_indices = @transform_1, window_bounds = array<i64: 5, 1024>}, {pipeline_mode = #tpu.pipeline_mode<synchronous>, transform_indices = @transform_2, window_bounds = array<i64: 3, 5>}, {pipeline_mode = #tpu.pipeline_mode<synchronous>, transform_indices = @transform_3, window_bounds = array<i64: 2, 5>}]} {
    %cst = arith.constant 0.000000e+00 : f32
    %0 = vector.broadcast %cst : f32 to vector<2x1024xf32>
    %c0_i32 = arith.constant 0 : i32
    %1 = arith.index_cast %c0_i32 : i32 to index
    %c0 = arith.constant 0 : index
    %c0_0 = arith.constant 0 : index
    %c0_1 = arith.constant 0 : index
    %2 = vector.load %arg1[%1, %c0, %c0_0, %c0_1] : memref<7x2x7x1024xf32, #tpu.memory_space<vmem>>, vector<1x2x7x1024xf32>
    %3 = vector.shape_cast %2 : vector<1x2x7x1024xf32> to vector<2x7x1024xf32>
    %cst_2 = arith.constant dense<0.000000e+00> : vector<2x1024xf32>
    %4 = vector.multi_reduction <add>, %3, %cst_2 [1] : vector<2x7x1024xf32> to vector<2x1024xf32>
    %5 = arith.addf %0, %4 : vector<2x1024xf32>
    %c1_i32 = arith.constant 1 : i32
    %6 = arith.index_cast %c1_i32 : i32 to index
    %c0_3 = arith.constant 0 : index
    %c0_4 = arith.constant 0 : index
    %c0_5 = arith.constant 0 : index
    %7 = vector.load %arg1[%6, %c0_3, %c0_4, %c0_5] : memref<7x2x7x1024xf32, #tpu.memory_space<vmem>>, vector<1x2x7x1024xf32>
    %8 = vector.shape_cast %7 : vector<1x2x7x1024xf32> to vector<2x7x1024xf32>
    %cst_6 = arith.constant dense<0.000000e+00> : vector<2x1024xf32>
    %9 = vector.multi_reduction <add>, %8, %cst_6 [1] : vector<2x7x1024xf32> to vector<2x1024xf32>
    %10 = arith.addf %5, %9 : vector<2x1024xf32>
    %c2_i32 = arith.constant 2 : i32
    %11 = arith.index_cast %c2_i32 : i32 to index
    %c0_7 = arith.constant 0 : index
    %c0_8 = arith.constant 0 : index
    %c0_9 = arith.constant 0 : index
    %12 = vector.load %arg1[%11, %c0_7, %c0_8, %c0_9] : memref<7x2x7x1024xf32, #tpu.memory_space<vmem>>, vector<1x2x7x1024xf32>
    %13 = vector.shape_cast %12 : vector<1x2x7x1024xf32> to vector<2x7x1024xf32>
    %cst_10 = arith.constant dense<0.000000e+00> : vector<2x1024xf32>
    %14 = vector.multi_reduction <add>, %13, %cst_10 [1] : vector<2x7x1024xf32> to vector<2x1024xf32>
    %15 = arith.addf %10, %14 : vector<2x1024xf32>
    %c3_i32 = arith.constant 3 : i32
    %16 = arith.index_cast %c3_i32 : i32 to index
    %c0_11 = arith.constant 0 : index
    %c0_12 = arith.constant 0 : index
    %c0_13 = arith.constant 0 : index
    %17 = vector.load %arg1[%16, %c0_11, %c0_12, %c0_13] : memref<7x2x7x1024xf32, #tpu.memory_space<vmem>>, vector<1x2x7x1024xf32>
    %18 = vector.shape_cast %17 : vector<1x2x7x1024xf32> to vector<2x7x1024xf32>
    %cst_14 = arith.constant dense<0.000000e+00> : vector<2x1024xf32>
    %19 = vector.multi_reduction <add>, %18, %cst_14 [1] : vector<2x7x1024xf32> to vector<2x1024xf32>
    %20 = arith.addf %15, %19 : vector<2x1024xf32>
    %c4_i32 = arith.constant 4 : i32
    %21 = arith.index_cast %c4_i32 : i32 to index
    %c0_15 = arith.constant 0 : index
    %c0_16 = arith.constant 0 : index
    %c0_17 = arith.constant 0 : index
    %22 = vector.load %arg1[%21, %c0_15, %c0_16, %c0_17] : memref<7x2x7x1024xf32, #tpu.memory_space<vmem>>, vector<1x2x7x1024xf32>
    %23 = vector.shape_cast %22 : vector<1x2x7x1024xf32> to vector<2x7x1024xf32>
    %cst_18 = arith.constant dense<0.000000e+00> : vector<2x1024xf32>
    %24 = vector.multi_reduction <add>, %23, %cst_18 [1] : vector<2x7x1024xf32> to vector<2x1024xf32>
    %25 = arith.addf %20, %24 : vector<2x1024xf32>
    %c5_i32 = arith.constant 5 : i32
    %26 = arith.index_cast %c5_i32 : i32 to index
    %c0_19 = arith.constant 0 : index
    %c0_20 = arith.constant 0 : index
    %c0_21 = arith.constant 0 : index
    %27 = vector.load %arg1[%26, %c0_19, %c0_20, %c0_21] : memref<7x2x7x1024xf32, #tpu.memory_space<vmem>>, vector<1x2x7x1024xf32>
    %28 = vector.shape_cast %27 : vector<1x2x7x1024xf32> to vector<2x7x1024xf32>
    %cst_22 = arith.constant dense<0.000000e+00> : vector<2x1024xf32>
    %29 = vector.multi_reduction <add>, %28, %cst_22 [1] : vector<2x7x1024xf32> to vector<2x1024xf32>
    %30 = arith.addf %25, %29 : vector<2x1024xf32>
    %c6_i32 = arith.constant 6 : i32
    %31 = arith.index_cast %c6_i32 : i32 to index
    %c0_23 = arith.constant 0 : index
    %c0_24 = arith.constant 0 : index
    %c0_25 = arith.constant 0 : index
    %32 = vector.load %arg1[%31, %c0_23, %c0_24, %c0_25] : memref<7x2x7x1024xf32, #tpu.memory_space<vmem>>, vector<1x2x7x1024xf32>
    %33 = vector.shape_cast %32 : vector<1x2x7x1024xf32> to vector<2x7x1024xf32>
    %cst_26 = arith.constant dense<0.000000e+00> : vector<2x1024xf32>
    %34 = vector.multi_reduction <add>, %33, %cst_26 [1] : vector<2x7x1024xf32> to vector<2x1024xf32>
    %35 = arith.addf %30, %34 : vector<2x1024xf32>
    %c7_i32 = arith.constant 7 : i32
    %c0_27 = arith.constant 0 : index
    %c0_28 = arith.constant 0 : index
    %36 = vector.load %arg2[%c0_27, %c0_28] : memref<5x1024xf32, #tpu.memory_space<vmem>>, vector<5x1024xf32>
    %cst_29 = arith.constant dense<0.000000e+00> : vector<2x5xf32>
    %37 = tpu.matmul %35, %36, %cst_29 {dimension_numbers = #tpu.dot_dimension_numbers<[1], [1], [0], [0], [0, 0, 1, 0], [], []>} : vector<2x1024xf32>, vector<5x1024xf32>, vector<2x5xf32> -> vector<2x5xf32>
    %c0_30 = arith.constant 0 : index
    %c0_31 = arith.constant 0 : index
    %38 = vector.load %arg3[%c0_30, %c0_31] : memref<3x5xf32, #tpu.memory_space<vmem>>, vector<1x5xf32>
    %39 = vector.broadcast %38 : vector<1x5xf32> to vector<2x5xf32>
    %40 = arith.addf %37, %39 : vector<2x5xf32>
    %cst_32 = arith.constant dense<0.000000e+00> : vector<5xf32>
    %41 = vector.multi_reduction <add>, %40, %cst_32 [0] : vector<2x5xf32> to vector<5xf32>
    %42 = vector.shape_cast %41 : vector<5xf32> to vector<1x5xf32>
    %cst_33 = arith.constant 2.000000e+00 : f32
    %43 = vector.broadcast %cst_33 : f32 to vector<1x5xf32>
    %44 = arith.divf %42, %43 : vector<1x5xf32>
    %45 = vector.broadcast %44 : vector<1x5xf32> to vector<2x5xf32>
    %46 = arith.subf %40, %45 : vector<2x5xf32>
    %47 = arith.mulf %46, %46 : vector<2x5xf32>
    %cst_34 = arith.constant dense<0.000000e+00> : vector<5xf32>
    %48 = vector.multi_reduction <add>, %47, %cst_34 [0] : vector<2x5xf32> to vector<5xf32>
    %49 = vector.shape_cast %48 : vector<5xf32> to vector<1x5xf32>
    %cst_35 = arith.constant 2.000000e+00 : f32
    %50 = vector.broadcast %cst_35 : f32 to vector<1x5xf32>
    %51 = arith.divf %49, %50 : vector<1x5xf32>
    %cst_36 = arith.constant 9.99999974E-6 : f32
    %52 = vector.broadcast %cst_36 : f32 to vector<1x5xf32>
    %53 = arith.addf %51, %52 : vector<1x5xf32>
    %54 = math.rsqrt %53 : vector<1x5xf32>
    %55 = vector.broadcast %44 : vector<1x5xf32> to vector<2x5xf32>
    %56 = arith.subf %40, %55 : vector<2x5xf32>
    %57 = vector.broadcast %54 : vector<1x5xf32> to vector<2x5xf32>
    %58 = arith.mulf %56, %57 : vector<2x5xf32>
    %c1 = arith.constant 1 : index
    %c0_37 = arith.constant 0 : index
    %59 = vector.load %arg3[%c1, %c0_37] : memref<3x5xf32, #tpu.memory_space<vmem>>, vector<1x5xf32>
    %60 = vector.broadcast %59 : vector<1x5xf32> to vector<2x5xf32>
    %61 = arith.mulf %58, %60 : vector<2x5xf32>
    %c2 = arith.constant 2 : index
    %c0_38 = arith.constant 0 : index
    %62 = vector.load %arg3[%c2, %c0_38] : memref<3x5xf32, #tpu.memory_space<vmem>>, vector<1x5xf32>
    %63 = vector.broadcast %62 : vector<1x5xf32> to vector<2x5xf32>
    %64 = arith.addf %61, %63 : vector<2x5xf32>
    %c0_39 = arith.constant 0 : index
    %c0_40 = arith.constant 0 : index
    %65 = vector.load %arg4[%c0_39, %c0_40] : memref<2x5xf32, #tpu.memory_space<vmem>>, vector<2x5xf32>
    tpu.vector_store %arg4[%c0_39, %c0_40], %64 {strides = array<i32>} : memref<2x5xf32, #tpu.memory_space<vmem>>, vector<2x5xf32>,
    return
  }
  func.func @transform_0(%arg0: i32) -> (i32, i32, i32, i32) {
    %c0_i32 = arith.constant 0 : i32
    %c0_i32_0 = arith.constant 0 : i32
    %c0_i32_1 = arith.constant 0 : i32
    %c0_i32_2 = arith.constant 0 : i32
    %c0_i32_3 = arith.constant 0 : i32
    return %c0_i32, %c0_i32_0, %c0_i32_1, %c0_i32_2 : i32, i32, i32, i32
  }
  func.func @transform_1(%arg0: i32) -> (i32, i32) {
    %c0_i32 = arith.constant 0 : i32
    %c0_i32_0 = arith.constant 0 : i32
    %c0_i32_1 = arith.constant 0 : i32
    return %c0_i32, %c0_i32_0 : i32, i32
  }
  func.func @transform_2(%arg0: i32) -> (i32, i32) {
    %c0_i32 = arith.constant 0 : i32
    %c0_i32_0 = arith.constant 0 : i32
    %c0_i32_1 = arith.constant 0 : i32
    return %c0_i32, %c0_i32_0 : i32, i32
  }
  func.func @transform_3(%arg0: i32) -> (i32, i32) {
    %c0_i32 = arith.constant 0 : i32
    %c0_i32_0 = arith.constant 0 : i32
    %c0_i32_1 = arith.constant 0 : i32
    return %c0_i32, %c0_i32_0 : i32, i32
  }
}

</mosaic_0001>

<bundles_post_ra>
// kernel: tpu_custom_call.1
= control target key start
LH: loop header
LB: loop body
LE: loop exit
PB: predicated region body
PF: predicated region fallthrough
CT: control target
= control target key end

     0   :  { %vm31_vm0 = vcmask 1046528   ;;  %vm1059_vm1 = vcmask 1041409   ;;  %s2063_s0 = inlined_call_operand.vmem [shape: f32[7,2,7,1024], index: 0, kind: input, shape index: {}]   ;;  %s2064_s1 = inlined_call_operand.vmem [shape: f32[5,1024], index: 1, kind: input, shape index: {}]   ;;  %s2065_s2 = inlined_call_operand.vmem [shape: f32[3,5], index: 2, kind: input, shape index: {}]   ;;  %s2066_s3 = inlined_call_operand.hbm [shape: f32[2,5], index: 3, kind: output, shape index: {}]  }
   0x1   :  { %v1031_v0 = vld [vmem:[%s2064_s1 + $0x8] sm:$0x1f]  ;;  %v1030_v1 = vld [vmem:[%s2064_s1] sm:$0x1f]  ;;  %v1033_v38 = vld [vmem:[%s2064_s1 + $0x18] sm:$0x1f] }
   0x2   :  { %v1035_v2 = vld [vmem:[%s2064_s1 + $0x28] sm:$0x1f]  ;;  %1076 = vmatprep.subr.mxu1 %v1031_v0  ;;  %v1034_v3 = vld [vmem:[%s2064_s1 + $0x20] sm:$0x1f] }
   0x3   :  { %1216 = vmatprep.subr.mxu0 %v1035_v2  ;;  %v16_v4 = vld [vmem:[%s2063_s0 + $0x8] sm:$0x7f]  ;;  %1077 = vmatpush1.xpose.msra.mxu1 %v1030_v1 }
   0x4   :  { %v24_v5 = vld [vmem:[%s2063_s0 + $0x48] sm:$0x7f]  ;;  %1217 = vmatpush1.xpose.msra.mxu0 %v1034_v3  ;;  %v39_v8 = vsel %vm31_vm0, %v16_v4, 0.0  ;;  %1146 = vmatprep.subr.mxu1 %v1033_v38 }
   0x5   :  { %v1407_v6 = vld [vmem:[%s2063_s0 + $0x88] sm:$0x7f]  ;;  %v95_v9 = vsel %vm31_vm0, %v24_v5, 0.0  ;;  %v40_v13 = vrot.slane %v39_v8, 4 }
   0x6   :  { %v1415_v7 = vld [vmem:[%s2063_s0 + $0xc8] sm:$0x7f]  ;;  %v184_v10 = vsel %vm31_vm0, %v1407_v6, 0.0  ;;  %v96_v14 = vrot.slane %v95_v9, 4 }
   0x7   :  { %v240_v11 = vsel %vm31_vm0, %v1415_v7, 0.0  ;;  %v1423_v12 = vld [vmem:[%s2063_s0 + $0x108] sm:$0x7f]  ;;  %v185_v15 = vrot.slane %v184_v10, 4  ;;  %v41_v22 = vadd.f32 %v40_v13, %v39_v8 }
   0x8   :  { %v241_v16 = vrot.slane %v240_v11, 4  ;;  %v1431_v17 = vld [vmem:[%s2063_s0 + $0x148] sm:$0x7f]  ;;  %v329_v18 = vsel %vm31_vm0, %v1423_v12, 0.0  ;;  %v97_v23 = vadd.f32 %v96_v14, %v95_v9 }
   0x9   :  { %v385_v19 = vsel %vm31_vm0, %v1431_v17, 0.0  ;;  %v1439_v20 = vld [vmem:[%s2063_s0 + $0x188] sm:$0x7f]  ;;  %v186_v24 = vadd.f32 %v185_v15, %v184_v10  ;;  %v330_v26 = vrot.slane %v329_v18, 4  ;;  %v42_v30 = vrot.slane %v41_v22, 2 }
   0xa   :  { %v1447_v21 = vld [vmem:[%s2063_s0 + $0x1c8] sm:$0x7f]  ;;  %v242_v25 = vadd.f32 %v241_v16, %v240_v11  ;;  %v386_v27 = vrot.slane %v385_v19, 4  ;;  %v474_v28 = vsel %vm31_vm0, %v1439_v20, 0.0  ;;  %v98_v31 = vrot.slane %v97_v23, 2 }
   0xb   :  { %v530_v29 = vsel %vm31_vm0, %v1447_v21, 0.0  ;;  %v187_v32 = vrot.slane %v186_v24, 2  ;;  %v331_v34 = vadd.f32 %v330_v26, %v329_v18  ;;  %v475_v36 = vrot.slane %v474_v28, 4  ;;  %v1455_v55 = vld [vmem:[%s2063_s0 + $0x208] sm:$0x7f] }
   0xc   :  { %v243_v33 = vrot.slane %v242_v25, 2  ;;  %v387_v35 = vadd.f32 %v386_v27, %v385_v19  ;;  %v531_v37 = vrot.slane %v530_v29, 4  ;;  %v43_v39 = vadd.f32 %v42_v30, %v41_v22  ;;  %v1463_v56 = vld [vmem:[%s2063_s0 + $0x248] sm:$0x7f] }
   0xd   :  { %v99_v40 = vadd.f32 %v98_v31, %v97_v23  ;;  %v188_v41 = vadd.f32 %v187_v32, %v186_v24  ;;  %v332_v43 = vrot.slane %v331_v34, 2  ;;  %v476_v45 = vadd.f32 %v475_v36, %v474_v28  ;;  %v1471_v1 = vld [vmem:[%s2063_s0 + $0x288] sm:$0x7f] }
   0xe   :  { %v244_v42 = vadd.f32 %v243_v33, %v242_v25  ;;  %v388_v44 = vrot.slane %v387_v35, 2  ;;  %v532_v46 = vadd.f32 %v531_v37, %v530_v29  ;;  %v44_v47 = vrot.slane %v43_v39, 1  ;;  %v1479_v2 = vld [vmem:[%s2063_s0 + $0x2c8] sm:$0x7f] }
   0xf   :  { %v100_v48 = vrot.slane %v99_v40, 1  ;;  %v189_v49 = vrot.slane %v188_v41, 1  ;;  %v333_v51 = vadd.f32 %v332_v43, %v331_v34  ;;  %v477_v53 = vrot.slane %v476_v45, 2  ;;  %v1487_v11 = vld [vmem:[%s2063_s0 + $0x308] sm:$0x7f] }
  0x10   :  { %v245_v50 = vrot.slane %v244_v42, 1  ;;  %v389_v52 = vadd.f32 %v388_v44, %v387_v35  ;;  %v533_v54 = vrot.slane %v532_v46, 2  ;;  %v45_v57 = vadd.f32 %v44_v47, %v43_v39  ;;  %v1495_v16 = vld [vmem:[%s2063_s0 + $0x348] sm:$0x7f] }
  0x11   :  { %v101_v58 = vadd.f32 %v100_v48, %v99_v40  ;;  %v190_v59 = vadd.f32 %v189_v49, %v188_v41  ;;  %v334_v61 = vrot.slane %v333_v51, 1  ;;  %v478_v63 = vadd.f32 %v477_v53, %v476_v45  ;;  %v20_v25 = vld [vmem:[%s2063_s0 + $0x28] sm:$0x7f] }
  0x12   :  { %v246_v60 = vadd.f32 %v245_v50, %v244_v42  ;;  %v390_v62 = vrot.slane %v389_v52, 1  ;;  %v534_v0 = vadd.f32 %v533_v54, %v532_v46  ;;  %v619_v5 = vsel %vm31_vm0, %v1455_v55, 0.0  ;;  %v28_v26 = vld [vmem:[%s2063_s0 + $0x68] sm:$0x7f] }
  0x13   :  { %v290_v3 = vadd.f32 %v190_v59, %v45_v57  ;;  %v675_v6 = vsel %vm31_vm0, %v1463_v56, 0.0  ;;  %v335_v7 = vadd.f32 %v334_v61, %v333_v51  ;;  %v479_v9 = vrot.slane %v478_v63, 1 }
  0x14   :  { %v298_v4 = vadd.f32 %v246_v60, %v101_v58  ;;  %v391_v8 = vadd.f32 %v390_v62, %v389_v52  ;;  %v535_v10 = vrot.slane %v534_v0, 1  ;;  %v620_v12 = vrot.slane %v619_v5, 4 }
  0x15   :  { %v676_v13 = vrot.slane %v675_v6, 4  ;;  %v764_v14 = vsel %vm31_vm0, %v1471_v1, 0.0  ;;  %v820_v15 = vsel %vm31_vm0, %v1479_v2, 0.0  ;;  %v435_v17 = vadd.f32 %v335_v7, %v290_v3 }
  0x16   :  { %v443_v18 = vadd.f32 %v391_v8, %v298_v4  ;;  %v480_v19 = vadd.f32 %v479_v9, %v478_v63  ;;  %v536_v20 = vadd.f32 %v535_v10, %v534_v0  ;;  %v621_v21 = vadd.f32 %v620_v12, %v619_v5  ;;  %v1411_v63 = vld [vmem:[%s2063_s0 + $0xa8] sm:$0x7f] }
  0x17   :  { %v677_v22 = vadd.f32 %v676_v13, %v675_v6  ;;  %v765_v23 = vrot.slane %v764_v14, 4  ;;  %v821_v24 = vrot.slane %v820_v15, 4  ;;  %v909_v29 = vsel %vm31_vm0, %v1487_v11, 0.0  ;;  %v1419_v0 = vld [vmem:[%s2063_s0 + $0xe8] sm:$0x7f] }
  0x18   :  { %v580_v27 = vadd.f32 %v480_v19, %v435_v17  ;;  %v588_v28 = vadd.f32 %v536_v20, %v443_v18  ;;  %v965_v30 = vsel %vm31_vm0, %v1495_v16, 0.0  ;;  %v622_v31 = vrot.slane %v621_v21, 2  ;;  %v1427_v5 = vld [vmem:[%s2063_s0 + $0x128] sm:$0x7f]  ;;  %v1037_v11 = vld [vmem:[%s2064_s1 + $0x38] sm:$0x1f] }
  0x19   :  { %v678_v32 = vrot.slane %v677_v22, 2  ;;  %v766_v33 = vadd.f32 %v765_v23, %v764_v14  ;;  %v822_v34 = vadd.f32 %v821_v24, %v820_v15  ;;  %v910_v35 = vrot.slane %v909_v29, 4  ;;  %v1435_v10 = vld [vmem:[%s2063_s0 + $0x168] sm:$0x7f]  ;;  %1286 = vmatprep.subr.mxu0 %v1037_v11 }
  0x1a   :  { %v966_v36 = vrot.slane %v965_v30, 4  ;;  %v67_v37 = vsel %vm31_vm0, %v20_v25, 0.0  ;;  %v123_v38 = vsel %vm31_vm0, %v28_v26, 0.0  ;;  %v623_v39 = vadd.f32 %v622_v31, %v621_v21  ;;  %v1443_v20 = vld [vmem:[%s2063_s0 + $0x1a8] sm:$0x7f] }
  0x1b   :  { %v679_v40 = vadd.f32 %v678_v32, %v677_v22  ;;  %v767_v41 = vrot.slane %v766_v33, 2  ;;  %v823_v42 = vrot.slane %v822_v34, 2  ;;  %v911_v43 = vadd.f32 %v910_v35, %v909_v29  ;;  %v1451_v21 = vld [vmem:[%s2063_s0 + $0x1e8] sm:$0x7f] }
  0x1c   :  { %v967_v44 = vadd.f32 %v966_v36, %v965_v30  ;;  %v68_v45 = vrot.slane %v67_v37, 4  ;;  %v124_v46 = vrot.slane %v123_v38, 4  ;;  %v624_v47 = vrot.slane %v623_v39, 1  ;;  %v1459_v26 = vld [vmem:[%s2063_s0 + $0x228] sm:$0x7f] }
  0x1d   :  { %v680_v48 = vrot.slane %v679_v40, 1  ;;  %v768_v49 = vadd.f32 %v767_v41, %v766_v33  ;;  %v824_v50 = vadd.f32 %v823_v42, %v822_v34  ;;  %v912_v51 = vrot.slane %v911_v43, 2  ;;  %v1467_v35 = vld [vmem:[%s2063_s0 + $0x268] sm:$0x7f] }
  0x1e   :  { %v968_v52 = vrot.slane %v967_v44, 2  ;;  %v69_v53 = vadd.f32 %v68_v45, %v67_v37  ;;  %v125_v54 = vadd.f32 %v124_v46, %v123_v38  ;;  %v625_v55 = vadd.f32 %v624_v47, %v623_v39 }
  0x1f   :  { %v681_v56 = vadd.f32 %v680_v48, %v679_v40  ;;  %v769_v57 = vrot.slane %v768_v49, 1  ;;  %v825_v58 = vrot.slane %v824_v50, 1  ;;  %v913_v59 = vadd.f32 %v912_v51, %v911_v43 }
  0x20   :  { %v969_v60 = vadd.f32 %v968_v52, %v967_v44  ;;  %v70_v61 = vrot.slane %v69_v53, 2  ;;  %v126_v62 = vrot.slane %v125_v54, 2  ;;  %v725_v1 = vadd.f32 %v625_v55, %v580_v27 }
  0x21   :  { %v733_v2 = vadd.f32 %v681_v56, %v588_v28  ;;  %v770_v3 = vadd.f32 %v769_v57, %v768_v49  ;;  %v826_v4 = vadd.f32 %v825_v58, %v824_v50  ;;  %v914_v6 = vrot.slane %v913_v59, 1 }
  0x22   :  { %v970_v7 = vrot.slane %v969_v60, 1  ;;  %v71_v8 = vadd.f32 %v70_v61, %v69_v53  ;;  %v127_v9 = vadd.f32 %v126_v62, %v125_v54  ;;  %v212_v14 = vsel %vm31_vm0, %v1411_v63, 0.0 }
  0x23   :  { %v870_v12 = vadd.f32 %v770_v3, %v725_v1  ;;  %v878_v13 = vadd.f32 %v826_v4, %v733_v2  ;;  %v268_v15 = vsel %vm31_vm0, %v1419_v0, 0.0  ;;  %v915_v16 = vadd.f32 %v914_v6, %v913_v59 }
  0x24   :  { %v971_v17 = vadd.f32 %v970_v7, %v969_v60  ;;  %v72_v18 = vrot.slane %v71_v8, 1  ;;  %v128_v19 = vrot.slane %v127_v9, 1  ;;  %v213_v22 = vrot.slane %v212_v14, 4 }
  0x25   :  { %v269_v23 = vrot.slane %v268_v15, 4  ;;  %v357_v24 = vsel %vm31_vm0, %v1427_v5, 0.0  ;;  %v413_v25 = vsel %vm31_vm0, %v1435_v10, 0.0  ;;  %v1015_v27 = vadd.f32 %v915_v16, %v870_v12 }
  0x26   :  { %v1023_v28 = vadd.f32 %v971_v17, %v878_v13  ;;  %v73_v29 = vadd.f32 %v72_v18, %v71_v8  ;;  %v129_v30 = vadd.f32 %v128_v19, %v127_v9  ;;  %v214_v31 = vadd.f32 %v213_v22, %v212_v14  ;;  %v1475_v8 = vld [vmem:[%s2063_s0 + $0x2a8] sm:$0x7f] }
  0x27   :  { %v270_v32 = vadd.f32 %v269_v23, %v268_v15  ;;  %v358_v33 = vrot.slane %v357_v24, 4  ;;  %v414_v34 = vrot.slane %v413_v25, 4  ;;  %v502_v37 = vsel %vm31_vm0, %v1443_v20, 0.0  ;;  %v1483_v9 = vld [vmem:[%s2063_s0 + $0x2e8] sm:$0x7f] }
  0x28   :  { %v1061_v36 = vsel %vm1059_vm1, %v1023_v28, %v1015_v27  ;;  %v558_v38 = vsel %vm31_vm0, %v1451_v21, 0.0  ;;  %v647_v39 = vsel %vm31_vm0, %v1459_v26, 0.0  ;;  %v215_v40 = vrot.slane %v214_v31, 2  ;;  %v1491_v14 = vld [vmem:[%s2063_s0 + $0x328] sm:$0x7f] }
  0x29   :  { %1140 = vmatprep.mubr.f32.mxu1 %v1061_v36  ;;  %v271_v41 = vrot.slane %v270_v32, 2  ;;  %v359_v42 = vadd.f32 %v358_v33, %v357_v24  ;;  %v415_v43 = vadd.f32 %v414_v34, %v413_v25  ;;  %v503_v44 = vrot.slane %v502_v37, 4  ;;  %v1499_v19 = vld [vmem:[%s2063_s0 + $0x368] sm:$0x7f]  ;;  %v15_v28 = vld [vmem:[%s2063_s0] sm:$0x7f] }
  0x2a   :  { %v559_v45 = vrot.slane %v558_v38, 4  ;;  %v648_v46 = vrot.slane %v647_v39, 4  ;;  %v703_v47 = vsel %vm31_vm0, %v1467_v35, 0.0  ;;  %v216_v48 = vadd.f32 %v215_v40, %v214_v31 }
  0x2b   :  { %v272_v49 = vadd.f32 %v271_v41, %v270_v32  ;;  %v360_v50 = vrot.slane %v359_v42, 2  ;;  %v416_v51 = vrot.slane %v415_v43, 2  ;;  %v504_v52 = vadd.f32 %v503_v44, %v502_v37  ;;  %v23_v37 = vld [vmem:[%s2063_s0 + $0x40] sm:$0x7f] }
  0x2c   :  { %v560_v53 = vadd.f32 %v559_v45, %v558_v38  ;;  %v649_v54 = vadd.f32 %v648_v46, %v647_v39  ;;  %v704_v55 = vrot.slane %v703_v47, 4  ;;  %v217_v56 = vrot.slane %v216_v48, 1 }
  0x2d   :  { %v273_v57 = vrot.slane %v272_v49, 1  ;;  %v361_v58 = vadd.f32 %v360_v50, %v359_v42  ;;  %v417_v59 = vadd.f32 %v416_v51, %v415_v43  ;;  %v505_v60 = vrot.slane %v504_v52, 2  ;;  %v1406_v42 = vld [vmem:[%s2063_s0 + $0x80] sm:$0x7f] }
  0x2e   :  { %v561_v61 = vrot.slane %v560_v53, 2  ;;  %v650_v62 = vrot.slane %v649_v54, 2  ;;  %v705_v63 = vadd.f32 %v704_v55, %v703_v47  ;;  %v218_v0 = vadd.f32 %v217_v56, %v216_v48  ;;  %v1414_v51 = vld [vmem:[%s2063_s0 + $0xc0] sm:$0x7f] }
  0x2f   :  { %v274_v1 = vadd.f32 %v273_v57, %v272_v49  ;;  %v362_v2 = vrot.slane %v361_v58, 1  ;;  %v418_v3 = vrot.slane %v417_v59, 1  ;;  %v506_v4 = vadd.f32 %v505_v60, %v504_v52 }
  0x30   :  { %v562_v5 = vadd.f32 %v561_v61, %v560_v53  ;;  %v651_v6 = vadd.f32 %v650_v62, %v649_v54  ;;  %v706_v7 = vrot.slane %v705_v63, 2  ;;  %v294_v10 = vadd.f32 %v218_v0, %v73_v29 }
  0x31   :  { %v302_v11 = vadd.f32 %v274_v1, %v129_v30  ;;  %v363_v12 = vadd.f32 %v362_v2, %v361_v58  ;;  %v419_v13 = vadd.f32 %v418_v3, %v417_v59  ;;  %v507_v15 = vrot.slane %v506_v4, 1 }
  0x32   :  { %v563_v16 = vrot.slane %v562_v5, 1  ;;  %v652_v17 = vrot.slane %v651_v6, 1  ;;  %v707_v18 = vadd.f32 %v706_v7, %v705_v63  ;;  %v792_v22 = vsel %vm31_vm0, %v1475_v8, 0.0 }
  0x33   :  { %v439_v20 = vadd.f32 %v363_v12, %v294_v10  ;;  %v447_v21 = vadd.f32 %v419_v13, %v302_v11  ;;  %v848_v23 = vsel %vm31_vm0, %v1483_v9, 0.0  ;;  %v508_v24 = vadd.f32 %v507_v15, %v506_v4 }
  0x34   :  { %v564_v25 = vadd.f32 %v563_v16, %v562_v5  ;;  %v653_v26 = vadd.f32 %v652_v17, %v651_v6  ;;  %v708_v27 = vrot.slane %v707_v18, 1  ;;  %v793_v29 = vrot.slane %v792_v22, 4 }
  0x35   :  { %v849_v30 = vrot.slane %v848_v23, 4  ;;  %v937_v31 = vsel %vm31_vm0, %v1491_v14, 0.0  ;;  %v993_v32 = vsel %vm31_vm0, %v1499_v19, 0.0  ;;  %v584_v33 = vadd.f32 %v508_v24, %v439_v20 }
  0x36   :  { %v592_v34 = vadd.f32 %v564_v25, %v447_v21  ;;  %v709_v35 = vadd.f32 %v708_v27, %v707_v18  ;;  %v938_v36 = vrot.slane %v937_v31, 4  ;;  %v794_v38 = vadd.f32 %v793_v29, %v792_v22 }
  0x37   :  { %v850_v39 = vadd.f32 %v849_v30, %v848_v23  ;;  %v994_v40 = vrot.slane %v993_v32, 4  ;;  %v32_v41 = vsel %vm31_vm0, %v15_v28, 0.0  ;;  %v729_v43 = vadd.f32 %v653_v26, %v584_v33 }
  0x38   :  { %v737_v44 = vadd.f32 %v709_v35, %v592_v34  ;;  %v939_v45 = vadd.f32 %v938_v36, %v937_v31  ;;  %v33_v46 = vrot.slane %v32_v41, 4  ;;  %v795_v47 = vrot.slane %v794_v38, 2 }
  0x39   :  { %v851_v48 = vrot.slane %v850_v39, 2  ;;  %v995_v49 = vadd.f32 %v994_v40, %v993_v32  ;;  %v88_v50 = vsel %vm31_vm0, %v23_v37, 0.0  ;;  %v177_v55 = vsel %vm31_vm0, %v1406_v42, 0.0 }
  0x3a   :  { %v940_v52 = vrot.slane %v939_v45, 2  ;;  %v34_v53 = vadd.f32 %v33_v46, %v32_v41  ;;  %v89_v54 = vrot.slane %v88_v50, 4  ;;  %v796_v56 = vadd.f32 %v795_v47, %v794_v38 }
  0x3b   :  { %v852_v57 = vadd.f32 %v851_v48, %v850_v39  ;;  %v996_v58 = vrot.slane %v995_v49, 2  ;;  %v178_v59 = vrot.slane %v177_v55, 4 }
  0x3c   :  { %8 = vsyncpa [#allocation3], 0  ;;  %v941_v60 = vadd.f32 %v940_v52, %v939_v45  ;;  %v35_v61 = vrot.slane %v34_v53, 2  ;;  %v90_v62 = vadd.f32 %v89_v54, %v88_v50  ;;  %v233_v63 = vsel %vm31_vm0, %v1414_v51, 0.0  ;;  %v1422_v12 = vld [vmem:[%s2063_s0 + $0x100] sm:$0x7f] }
  0x3d   :  { %v797_v0 = vrot.slane %v796_v56, 1  ;;  %v853_v1 = vrot.slane %v852_v57, 1  ;;  %v997_v2 = vadd.f32 %v996_v58, %v995_v49  ;;  %v179_v3 = vadd.f32 %v178_v59, %v177_v55  ;;  %v1430_v21 = vld [vmem:[%s2063_s0 + $0x140] sm:$0x7f]  ;;  %s1538_s10 = smov [#allocation2]  }
  0x3e   :  { %v942_v4 = vrot.slane %v941_v60, 1  ;;  %v36_v5 = vadd.f32 %v35_v61, %v34_v53  ;;  %v91_v6 = vrot.slane %v90_v62, 2  ;;  %v234_v7 = vrot.slane %v233_v63, 4  ;;  %v1438_v22 = vld [vmem:[%s2063_s0 + $0x180] sm:$0x7f]  ;;  %s1398_s11 = sshll.u32 %s1538_s10, 4  ;;  %s1399_s11 = int_to_ptr.vmem [resolvable:$true] %s1398_s11 }
  0x3f   :  { %v798_v8 = vadd.f32 %v797_v0, %v796_v56  ;;  %v854_v9 = vadd.f32 %v853_v1, %v852_v57  ;;  %v998_v10 = vrot.slane %v997_v2, 1  ;;  %v180_v11 = vrot.slane %v179_v3, 2  ;;  %v1446_v31 = vld [vmem:[%s2063_s0 + $0x1c0] sm:$0x7f]  ;;  %s1514_s12 = scalar_lea.vmem %s1399_s11, 32  ;;  %p1519_p1 = scmp.lt.s32.totalorder %s1399_s11, %s1399_s11 }
  0x40   :  { %v943_v13 = vadd.f32 %v942_v4, %v941_v60  ;;  %v37_v14 = vrot.slane %v36_v5, 1  ;;  %v92_v15 = vadd.f32 %v91_v6, %v90_v62  ;;  %v235_v16 = vadd.f32 %v234_v7, %v233_v63  ;;  %v1454_v32 = vld [vmem:[%s2063_s0 + $0x200] sm:$0x7f]  ;;  %p1515_p0 = scmp.ne.s32.totalorder %s1399_s11, %s1514_s12  ;;  %p1520_p2 = scmp.lt.s32.totalorder %s1514_s12, %s1514_s12 }
  0x41   :  { %v874_v17 = vadd.f32 %v798_v8, %v729_v43  ;;  %v882_v18 = vadd.f32 %v854_v9, %v737_v44  ;;  %v999_v19 = vadd.f32 %v998_v10, %v997_v2  ;;  %v181_v20 = vadd.f32 %v180_v11, %v179_v3  ;;  %v1462_v41 = vld [vmem:[%s2063_s0 + $0x240] sm:$0x7f] }
  0x42   :  { %v38_v23 = vadd.f32 %v37_v14, %v36_v5  ;;  %v93_v24 = vrot.slane %v92_v15, 1  ;;  %v236_v25 = vrot.slane %v235_v16, 2  ;;  %v322_v26 = vsel %vm31_vm0, %v1422_v12, 0.0  ;;  %v1470_v50 = vld [vmem:[%s2063_s0 + $0x280] sm:$0x7f]  ;;  %p1521_p3 = por %p1520_p2, %p1519_p1 }
  0x43   :  { %v1019_v27 = vadd.f32 %v943_v13, %v874_v17  ;;  %v1027_v28 = vadd.f32 %v999_v19, %v882_v18  ;;  %v182_v29 = vrot.slane %v181_v20, 1  ;;  %v323_v30 = vrot.slane %v322_v26, 4  ;;  %v1478_v59 = vld [vmem:[%s2063_s0 + $0x2c0] sm:$0x7f] }
  0x44   :  { %v94_v33 = vadd.f32 %v93_v24, %v92_v15  ;;  %v237_v34 = vadd.f32 %v236_v25, %v235_v16  ;;  %v378_v35 = vsel %vm31_vm0, %v1430_v21, 0.0  ;;  %v467_v36 = vsel %vm31_vm0, %v1438_v22, 0.0  ;;  %v1486_v16 = vld [vmem:[%s2063_s0 + $0x300] sm:$0x7f]  ;;  %p1522_p4 = pnand %p1521_p3, %p1515_p0 }
  0x45   :  { %v1065_v37 = vsel %vm1059_vm1, %v1027_v28, %v1019_v27  ;;  %v183_v38 = vadd.f32 %v182_v29, %v181_v20  ;;  %v324_v39 = vadd.f32 %v323_v30, %v322_v26  ;;  %v379_v40 = vrot.slane %v378_v35, 4  ;;  %v1494_v25 = vld [vmem:[%s2063_s0 + $0x340] sm:$0x7f] }
  0x46   :  { %1280 = vmatprep.mubr.f32.mxu0 %v1065_v37  ;;  %v238_v42 = vrot.slane %v237_v34, 1  ;;  %v468_v43 = vrot.slane %v467_v36, 4  ;;  %v523_v44 = vsel %vm31_vm0, %v1446_v31, 0.0  ;;  %v612_v45 = vsel %vm31_vm0, %v1454_v32, 0.0 }
  0x47   :  { %v289_v46 = vadd.f32 %v183_v38, %v38_v23  ;;  %v325_v47 = vrot.slane %v324_v39, 2  ;;  %v380_v48 = vadd.f32 %v379_v40, %v378_v35  ;;  %v524_v49 = vrot.slane %v523_v44, 4  ;;  %v27_v35 = vld [vmem:[%s2063_s0 + $0x60] sm:$0x7f] }
  0x48   :  { %v239_v51 = vadd.f32 %v238_v42, %v237_v34  ;;  %v469_v52 = vadd.f32 %v468_v43, %v467_v36  ;;  %v613_v53 = vrot.slane %v612_v45, 4  ;;  %v668_v54 = vsel %vm31_vm0, %v1462_v41, 0.0  ;;  %v19_v34 = vld [vmem:[%s2063_s0 + $0x20] sm:$0x7f] }
  0x49   :  { %v326_v55 = vadd.f32 %v325_v47, %v324_v39  ;;  %v381_v56 = vrot.slane %v380_v48, 2  ;;  %v525_v57 = vadd.f32 %v524_v49, %v523_v44  ;;  %v669_v58 = vrot.slane %v668_v54, 4  ;;  %v1410_v44 = vld [vmem:[%s2063_s0 + $0xa0] sm:$0x7f] }
  0x4a   :  { %v297_v60 = vadd.f32 %v239_v51, %v94_v33  ;;  %v470_v61 = vrot.slane %v469_v52, 2  ;;  %v614_v62 = vadd.f32 %v613_v53, %v612_v45  ;;  %v757_v63 = vsel %vm31_vm0, %v1470_v50, 0.0  ;;  %v1418_v45 = vld [vmem:[%s2063_s0 + $0xe0] sm:$0x7f] }
  0x4b   :  { %v327_v0 = vrot.slane %v326_v55, 1  ;;  %v382_v1 = vadd.f32 %v381_v56, %v380_v48  ;;  %v526_v2 = vrot.slane %v525_v57, 2  ;;  %v670_v3 = vadd.f32 %v669_v58, %v668_v54  ;;  %v1426_v58 = vld [vmem:[%s2063_s0 + $0x120] sm:$0x7f] }
  0x4c   :  { %v471_v4 = vadd.f32 %v470_v61, %v469_v52  ;;  %v615_v5 = vrot.slane %v614_v62, 2  ;;  %v758_v6 = vrot.slane %v757_v63, 4  ;;  %v813_v7 = vsel %vm31_vm0, %v1478_v59, 0.0 }
  0x4d   :  { %v328_v8 = vadd.f32 %v327_v0, %v326_v55  ;;  %v383_v9 = vrot.slane %v382_v1, 1  ;;  %v527_v10 = vadd.f32 %v526_v2, %v525_v57  ;;  %v671_v11 = vrot.slane %v670_v3, 2 }
  0x4e   :  { %v472_v12 = vrot.slane %v471_v4, 1  ;;  %v616_v13 = vadd.f32 %v615_v5, %v614_v62  ;;  %v759_v14 = vadd.f32 %v758_v6, %v757_v63  ;;  %v814_v15 = vrot.slane %v813_v7, 4 }
  0x4f   :  { %v384_v17 = vadd.f32 %v383_v9, %v382_v1  ;;  %v434_v18 = vadd.f32 %v328_v8, %v289_v46  ;;  %v528_v19 = vrot.slane %v527_v10, 1  ;;  %v672_v20 = vadd.f32 %v671_v11, %v670_v3  ;;  %v1434_v3 = vld [vmem:[%s2063_s0 + $0x160] sm:$0x7f] }
  0x50   :  { %v473_v21 = vadd.f32 %v472_v12, %v471_v4  ;;  %v617_v22 = vrot.slane %v616_v13, 1  ;;  %v760_v23 = vrot.slane %v759_v14, 2  ;;  %v815_v24 = vadd.f32 %v814_v15, %v813_v7 }
  0x51   :  { %v442_v26 = vadd.f32 %v384_v17, %v297_v60  ;;  %v529_v27 = vadd.f32 %v528_v19, %v527_v10  ;;  %v673_v28 = vrot.slane %v672_v20, 1  ;;  %v902_v29 = vsel %vm31_vm0, %v1486_v16, 0.0 }
  0x52   :  { %v579_v30 = vadd.f32 %v473_v21, %v434_v18  ;;  %v618_v31 = vadd.f32 %v617_v22, %v616_v13  ;;  %v761_v32 = vadd.f32 %v760_v23, %v759_v14  ;;  %v816_v33 = vrot.slane %v815_v24, 2 }
  0x53   :  { %v587_v36 = vadd.f32 %v529_v27, %v442_v26  ;;  %v674_v37 = vadd.f32 %v673_v28, %v672_v20  ;;  %v903_v38 = vrot.slane %v902_v29, 4  ;;  %v958_v39 = vsel %vm31_vm0, %v1494_v25, 0.0 }
  0x54   :  { %v724_v40 = vadd.f32 %v618_v31, %v579_v30  ;;  %v762_v41 = vrot.slane %v761_v32, 1  ;;  %v817_v42 = vadd.f32 %v816_v33, %v815_v24  ;;  %v959_v43 = vrot.slane %v958_v39, 4  ;;  %v1442_v24 = vld [vmem:[%s2063_s0 + $0x1a0] sm:$0x7f] }
  0x55   :  { %v732_v46 = vadd.f32 %v674_v37, %v587_v36  ;;  %v904_v47 = vadd.f32 %v903_v38, %v902_v29  ;;  %v60_v48 = vsel %vm31_vm0, %v19_v34, 0.0  ;;  %v116_v49 = vsel %vm31_vm0, %v27_v35, 0.0  ;;  %v1450_v33 = vld [vmem:[%s2063_s0 + $0x1e0] sm:$0x7f]  ;;  %v1032_v35 = vld [vmem:[%s2064_s1 + $0x10] sm:$0x1f] }
  0x56   :  { %v763_v50 = vadd.f32 %v762_v41, %v761_v32  ;;  %v818_v51 = vrot.slane %v817_v42, 1  ;;  %v960_v52 = vadd.f32 %v959_v43, %v958_v39  ;;  %v61_v53 = vrot.slane %v60_v48, 4  ;;  %v1458_v34 = vld [vmem:[%s2063_s0 + $0x220] sm:$0x7f] }
  0x57   :  { %v905_v54 = vrot.slane %v904_v47, 2  ;;  %v117_v55 = vrot.slane %v116_v49, 4  ;;  %v205_v56 = vsel %vm31_vm0, %v1410_v44, 0.0  ;;  %v261_v57 = vsel %vm31_vm0, %v1418_v45, 0.0  ;;  %v1466_v44 = vld [vmem:[%s2063_s0 + $0x260] sm:$0x7f] }
  0x58   :  { %v819_v59 = vadd.f32 %v818_v51, %v817_v42  ;;  %v869_v60 = vadd.f32 %v763_v50, %v724_v40  ;;  %v961_v61 = vrot.slane %v960_v52, 2  ;;  %v62_v62 = vadd.f32 %v61_v53, %v60_v48  ;;  %v1474_v53 = vld [vmem:[%s2063_s0 + $0x2a0] sm:$0x7f] }
  0x59   :  { %v906_v63 = vadd.f32 %v905_v54, %v904_v47  ;;  %v118_v0 = vadd.f32 %v117_v55, %v116_v49  ;;  %v206_v1 = vrot.slane %v205_v56, 4  ;;  %v262_v2 = vrot.slane %v261_v57, 4  ;;  %v1482_v54 = vld [vmem:[%s2063_s0 + $0x2e0] sm:$0x7f] }
  0x5a   :  { %v877_v4 = vadd.f32 %v819_v59, %v732_v46  ;;  %v962_v5 = vadd.f32 %v961_v61, %v960_v52  ;;  %v63_v6 = vrot.slane %v62_v62, 2  ;;  %v350_v7 = vsel %vm31_vm0, %v1426_v58, 0.0 }
  0x5b   :  { %v907_v8 = vrot.slane %v906_v63, 1  ;;  %v119_v9 = vrot.slane %v118_v0, 2  ;;  %v207_v10 = vadd.f32 %v206_v1, %v205_v56  ;;  %v263_v11 = vadd.f32 %v262_v2, %v261_v57 }
  0x5c   :  { %v963_v12 = vrot.slane %v962_v5, 1  ;;  %v64_v13 = vadd.f32 %v63_v6, %v62_v62  ;;  %v351_v14 = vrot.slane %v350_v7, 4  ;;  %v406_v15 = vsel %vm31_vm0, %v1434_v3, 0.0  ;;  %v1490_v3 = vld [vmem:[%s2063_s0 + $0x320] sm:$0x7f] }
  0x5d   :  { %v908_v16 = vadd.f32 %v907_v8, %v906_v63  ;;  %v120_v17 = vadd.f32 %v119_v9, %v118_v0  ;;  %v208_v18 = vrot.slane %v207_v10, 2  ;;  %v264_v19 = vrot.slane %v263_v11, 2 }
  0x5e   :  { %v964_v20 = vadd.f32 %v963_v12, %v962_v5  ;;  %v65_v21 = vrot.slane %v64_v13, 1  ;;  %v352_v22 = vadd.f32 %v351_v14, %v350_v7  ;;  %v407_v23 = vrot.slane %v406_v15, 4  ;;  %v1498_v12 = vld [vmem:[%s2063_s0 + $0x360] sm:$0x7f] }
  0x5f   :  { %v1014_v25 = vadd.f32 %v908_v16, %v869_v60  ;;  %v121_v26 = vrot.slane %v120_v17, 1  ;;  %v209_v27 = vadd.f32 %v208_v18, %v207_v10  ;;  %v265_v28 = vadd.f32 %v264_v19, %v263_v11 }
  0x60   :  { %v1022_v29 = vadd.f32 %v964_v20, %v877_v4  ;;  %v66_v30 = vadd.f32 %v65_v21, %v64_v13  ;;  %v353_v31 = vrot.slane %v352_v22, 2  ;;  %v408_v32 = vadd.f32 %v407_v23, %v406_v15 }
  0x61   :  { %v122_v36 = vadd.f32 %v121_v26, %v120_v17  ;;  %v210_v37 = vrot.slane %v209_v27, 1  ;;  %v266_v38 = vrot.slane %v265_v28, 1  ;;  %v495_v39 = vsel %vm31_vm0, %v1442_v24, 0.0 }
  0x62   :  { %v1060_v40 = vsel %vm1059_vm1, %v1022_v29, %v1014_v25  ;;  %v354_v41 = vadd.f32 %v353_v31, %v352_v22  ;;  %v409_v42 = vrot.slane %v408_v32, 2  ;;  %v496_v43 = vrot.slane %v495_v39, 4  ;;  %v18_v29 = vld [vmem:[%s2063_s0 + $0x18] sm:$0x7f] }
  0x63   :  { %1141 = vmatmul.mubr.f32.vlgmr.msra.gmra.mrb[0].mxu1 %v1060_v40  ;;  %v211_v45 = vadd.f32 %v210_v37, %v209_v27  ;;  %v267_v46 = vadd.f32 %v266_v38, %v265_v28  ;;  %v551_v47 = vsel %vm31_vm0, %v1450_v33, 0.0  ;;  %v640_v48 = vsel %vm31_vm0, %v1458_v34, 0.0  ;;  %v26_v38 = vld [vmem:[%s2063_s0 + $0x58] sm:$0x7f] }
  0x64   :  { %1147 = vmatpush1.xpose.msra.mxu1 %v1032_v35  ;;  %v355_v49 = vrot.slane %v354_v41, 1  ;;  %v410_v50 = vadd.f32 %v409_v42, %v408_v32  ;;  %v497_v51 = vadd.f32 %v496_v43, %v495_v39  ;;  %v552_v52 = vrot.slane %v551_v47, 4 }
  0x65   :  { %v293_v55 = vadd.f32 %v211_v45, %v66_v30  ;;  %v301_v56 = vadd.f32 %v267_v46, %v122_v36  ;;  %v641_v57 = vrot.slane %v640_v48, 4  ;;  %v696_v58 = vsel %vm31_vm0, %v1466_v44, 0.0 }
  0x66   :  { %v356_v59 = vadd.f32 %v355_v49, %v354_v41  ;;  %v411_v60 = vrot.slane %v410_v50, 1  ;;  %v498_v61 = vrot.slane %v497_v51, 2  ;;  %v553_v62 = vadd.f32 %v552_v52, %v551_v47  ;;  %v1409_v47 = vld [vmem:[%s2063_s0 + $0x98] sm:$0x7f] }
  0x67   :  { %v642_v63 = vadd.f32 %v641_v57, %v640_v48  ;;  %v697_v0 = vrot.slane %v696_v58, 4  ;;  %v785_v1 = vsel %vm31_vm0, %v1474_v53, 0.0  ;;  %v841_v2 = vsel %vm31_vm0, %v1482_v54, 0.0 }
  0x68   :  { %v412_v4 = vadd.f32 %v411_v60, %v410_v50  ;;  %v438_v5 = vadd.f32 %v356_v59, %v293_v55  ;;  %v499_v6 = vadd.f32 %v498_v61, %v497_v51  ;;  %v554_v7 = vrot.slane %v553_v62, 2  ;;  %v1425_v61 = vld [vmem:[%s2063_s0 + $0x118] sm:$0x7f] }
  0x69   :  { %v643_v8 = vrot.slane %v642_v63, 2  ;;  %v698_v9 = vadd.f32 %v697_v0, %v696_v58  ;;  %v786_v10 = vrot.slane %v785_v1, 4  ;;  %v842_v11 = vrot.slane %v841_v2, 4 }
  0x6a   :  { %v446_v13 = vadd.f32 %v412_v4, %v301_v56  ;;  %v500_v14 = vrot.slane %v499_v6, 1  ;;  %v555_v15 = vadd.f32 %v554_v7, %v553_v62  ;;  %v930_v16 = vsel %vm31_vm0, %v1490_v3, 0.0  ;;  %v1417_v56 = vld [vmem:[%s2063_s0 + $0xd8] sm:$0x7f] }
  0x6b   :  { %v644_v17 = vadd.f32 %v643_v8, %v642_v63  ;;  %v699_v18 = vrot.slane %v698_v9, 2  ;;  %v787_v19 = vadd.f32 %v786_v10, %v785_v1  ;;  %v843_v20 = vadd.f32 %v842_v11, %v841_v2 }
  0x6c   :  { %v501_v21 = vadd.f32 %v500_v14, %v499_v6  ;;  %v556_v22 = vrot.slane %v555_v15, 1  ;;  %v931_v23 = vrot.slane %v930_v16, 4  ;;  %v986_v24 = vsel %vm31_vm0, %v1498_v12, 0.0  ;;  %v1433_v6 = vld [vmem:[%s2063_s0 + $0x158] sm:$0x7f] }
  0x6d   :  { %v645_v25 = vrot.slane %v644_v17, 1  ;;  %v700_v26 = vadd.f32 %v699_v18, %v698_v9  ;;  %v788_v27 = vrot.slane %v787_v19, 2  ;;  %v844_v28 = vrot.slane %v843_v20, 2 }
  0x6e   :  { %v557_v30 = vadd.f32 %v556_v22, %v555_v15  ;;  %v583_v31 = vadd.f32 %v501_v21, %v438_v5  ;;  %v932_v32 = vadd.f32 %v931_v23, %v930_v16  ;;  %v987_v33 = vrot.slane %v986_v24, 4  ;;  %v1441_v15 = vld [vmem:[%s2063_s0 + $0x198] sm:$0x7f]  ;;  %v1036_v21 = vld [vmem:[%s2064_s1 + $0x30] sm:$0x1f] }
  0x6f   :  { %v646_v34 = vadd.f32 %v645_v25, %v644_v17  ;;  %v701_v35 = vrot.slane %v700_v26, 1  ;;  %v789_v36 = vadd.f32 %v788_v27, %v787_v19  ;;  %v845_v37 = vadd.f32 %v844_v28, %v843_v20  ;;  %v1449_v25 = vld [vmem:[%s2063_s0 + $0x1d8] sm:$0x7f] }
  0x70   :  { %v591_v39 = vadd.f32 %v557_v30, %v446_v13  ;;  %v933_v40 = vrot.slane %v932_v32, 2  ;;  %v988_v41 = vadd.f32 %v987_v33, %v986_v24  ;;  %v53_v42 = vsel %vm31_vm0, %v18_v29, 0.0  ;;  %v1457_v30 = vld [vmem:[%s2063_s0 + $0x218] sm:$0x7f] }
  0x71   :  { %v702_v43 = vadd.f32 %v701_v35, %v700_v26  ;;  %v728_v44 = vadd.f32 %v646_v34, %v583_v31  ;;  %v790_v45 = vrot.slane %v789_v36, 1  ;;  %v846_v46 = vrot.slane %v845_v37, 1 }
  0x72   :  { %v934_v48 = vadd.f32 %v933_v40, %v932_v32  ;;  %v989_v49 = vrot.slane %v988_v41, 2  ;;  %v54_v50 = vrot.slane %v53_v42, 4  ;;  %v109_v51 = vsel %vm31_vm0, %v26_v38, 0.0 }
  0x73   :  { %v736_v52 = vadd.f32 %v702_v43, %v591_v39  ;;  %v791_v53 = vadd.f32 %v790_v45, %v789_v36  ;;  %v847_v54 = vadd.f32 %v846_v46, %v845_v37  ;;  %v110_v55 = vrot.slane %v109_v51, 4  ;;  %v1465_v39 = vld [vmem:[%s2063_s0 + $0x258] sm:$0x7f] }
  0x74   :  { %v935_v57 = vrot.slane %v934_v48, 1  ;;  %v990_v58 = vadd.f32 %v989_v49, %v988_v41  ;;  %v55_v59 = vadd.f32 %v54_v50, %v53_v42  ;;  %v198_v60 = vsel %vm31_vm0, %v1409_v47, 0.0 }
  0x75   :  { %v873_v62 = vadd.f32 %v791_v53, %v728_v44  ;;  %v881_v63 = vadd.f32 %v847_v54, %v736_v52  ;;  %v111_v0 = vadd.f32 %v110_v55, %v109_v51  ;;  %v199_v1 = vrot.slane %v198_v60, 4  ;;  %v1473_v52 = vld [vmem:[%s2063_s0 + $0x298] sm:$0x7f] }
  0x76   :  { %v936_v2 = vadd.f32 %v935_v57, %v934_v48  ;;  %v991_v3 = vrot.slane %v990_v58, 1  ;;  %v56_v4 = vrot.slane %v55_v59, 2  ;;  %v254_v5 = vsel %vm31_vm0, %v1417_v56, 0.0 }
  0x77   :  { %v112_v7 = vrot.slane %v111_v0, 2  ;;  %v200_v8 = vadd.f32 %v199_v1, %v198_v60  ;;  %v255_v9 = vrot.slane %v254_v5, 4  ;;  %v343_v10 = vsel %vm31_vm0, %v1425_v61, 0.0  ;;  %v1481_v61 = vld [vmem:[%s2063_s0 + $0x2d8] sm:$0x7f] }
  0x78   :  { %v992_v11 = vadd.f32 %v991_v3, %v990_v58  ;;  %v1018_v12 = vadd.f32 %v936_v2, %v873_v62  ;;  %v57_v13 = vadd.f32 %v56_v4, %v55_v59  ;;  %v344_v14 = vrot.slane %v343_v10, 4 }
  0x79   :  { %v113_v16 = vadd.f32 %v112_v7, %v111_v0  ;;  %v201_v17 = vrot.slane %v200_v8, 2  ;;  %v256_v18 = vadd.f32 %v255_v9, %v254_v5  ;;  %v399_v19 = vsel %vm31_vm0, %v1433_v6, 0.0  ;;  %v1489_v6 = vld [vmem:[%s2063_s0 + $0x318] sm:$0x7f] }
  0x7a   :  { %v1026_v20 = vadd.f32 %v992_v11, %v881_v63  ;;  %v58_v22 = vrot.slane %v57_v13, 1  ;;  %v345_v23 = vadd.f32 %v344_v14, %v343_v10  ;;  %v400_v24 = vrot.slane %v399_v19, 4 }
  0x7b   :  { %v114_v26 = vrot.slane %v113_v16, 1  ;;  %v202_v27 = vadd.f32 %v201_v17, %v200_v8  ;;  %v257_v28 = vrot.slane %v256_v18, 2  ;;  %v488_v29 = vsel %vm31_vm0, %v1441_v15, 0.0  ;;  %v1497_v15 = vld [vmem:[%s2063_s0 + $0x358] sm:$0x7f] }
  0x7c   :  { %v1064_v31 = vsel %vm1059_vm1, %v1026_v20, %v1018_v12  ;;  %v59_v32 = vadd.f32 %v58_v22, %v57_v13  ;;  %v346_v33 = vrot.slane %v345_v23, 2  ;;  %v401_v34 = vadd.f32 %v400_v24, %v399_v19  ;;  %v22_v24 = vld [vmem:[%s2063_s0 + $0x38] sm:$0x7f] }
  0x7d   :  { %1281 = vmatmul.mubr.f32.vlgmr.msra.gmra.mrb[0].mxu0 %v1064_v31  ;;  %v115_v35 = vadd.f32 %v114_v26, %v113_v16  ;;  %v203_v36 = vrot.slane %v202_v27, 1  ;;  %v258_v37 = vadd.f32 %v257_v28, %v256_v18  ;;  %v489_v38 = vrot.slane %v488_v29, 4 }
  0x7e   :  { %1287 = vmatpush1.xpose.msra.mxu0 %v1036_v21  ;;  %v347_v40 = vadd.f32 %v346_v33, %v345_v23  ;;  %v402_v41 = vrot.slane %v401_v34, 2  ;;  %v544_v42 = vsel %vm31_vm0, %v1449_v25, 0.0  ;;  %v633_v43 = vsel %vm31_vm0, %v1457_v30, 0.0  ;;  %v30_v33 = vld [vmem:[%s2063_s0 + $0x78] sm:$0x7f] }
  0x7f   :  { %v204_v44 = vadd.f32 %v203_v36, %v202_v27  ;;  %v259_v45 = vrot.slane %v258_v37, 1  ;;  %v490_v46 = vadd.f32 %v489_v38, %v488_v29  ;;  %v545_v47 = vrot.slane %v544_v42, 4 }
  0x80   :  { %v348_v48 = vrot.slane %v347_v40, 1  ;;  %v403_v49 = vadd.f32 %v402_v41, %v401_v34  ;;  %v634_v50 = vrot.slane %v633_v43, 4  ;;  %v689_v51 = vsel %vm31_vm0, %v1465_v39, 0.0 }
  0x81   :  { %v260_v53 = vadd.f32 %v259_v45, %v258_v37  ;;  %v292_v54 = vadd.f32 %v204_v44, %v59_v32  ;;  %v491_v55 = vrot.slane %v490_v46, 2  ;;  %v546_v56 = vadd.f32 %v545_v47, %v544_v42  ;;  %v1413_v42 = vld [vmem:[%s2063_s0 + $0xb8] sm:$0x7f] }
  0x82   :  { %v349_v57 = vadd.f32 %v348_v48, %v347_v40  ;;  %v404_v58 = vrot.slane %v403_v49, 1  ;;  %v635_v59 = vadd.f32 %v634_v50, %v633_v43  ;;  %v690_v60 = vrot.slane %v689_v51, 4 }
  0x83   :  { %v300_v62 = vadd.f32 %v260_v53, %v115_v35  ;;  %v492_v63 = vadd.f32 %v491_v55, %v490_v46  ;;  %v547_v0 = vrot.slane %v546_v56, 2  ;;  %v778_v1 = vsel %vm31_vm0, %v1473_v52, 0.0 }
  0x84   :  { %v405_v2 = vadd.f32 %v404_v58, %v403_v49  ;;  %v437_v3 = vadd.f32 %v349_v57, %v292_v54  ;;  %v636_v4 = vrot.slane %v635_v59, 2  ;;  %v691_v5 = vadd.f32 %v690_v60, %v689_v51  ;;  %v1421_v51 = vld [vmem:[%s2063_s0 + $0xf8] sm:$0x7f] }
  0x85   :  { %v493_v7 = vrot.slane %v492_v63, 1  ;;  %v548_v8 = vadd.f32 %v547_v0, %v546_v56  ;;  %v779_v9 = vrot.slane %v778_v1, 4  ;;  %v834_v10 = vsel %vm31_vm0, %v1481_v61, 0.0  ;;  %v1429_v60 = vld [vmem:[%s2063_s0 + $0x138] sm:$0x7f] }
  0x86   :  { %v445_v11 = vadd.f32 %v405_v2, %v300_v62  ;;  %v637_v12 = vadd.f32 %v636_v4, %v635_v59  ;;  %v692_v13 = vrot.slane %v691_v5, 2  ;;  %v835_v14 = vrot.slane %v834_v10, 4 }
  0x87   :  { %v494_v16 = vadd.f32 %v493_v7, %v492_v63  ;;  %v549_v17 = vrot.slane %v548_v8, 1  ;;  %v780_v18 = vadd.f32 %v779_v9, %v778_v1  ;;  %v923_v19 = vsel %vm31_vm0, %v1489_v6, 0.0 }
  0x88   :  { %v638_v20 = vrot.slane %v637_v12, 1  ;;  %v693_v21 = vadd.f32 %v692_v13, %v691_v5  ;;  %v836_v22 = vadd.f32 %v835_v14, %v834_v10  ;;  %v924_v23 = vrot.slane %v923_v19, 4  ;;  %v1437_v5 = vld [vmem:[%s2063_s0 + $0x178] sm:$0x7f] }
  0x89   :  { %v550_v25 = vadd.f32 %v549_v17, %v548_v8  ;;  %v582_v26 = vadd.f32 %v494_v16, %v437_v3  ;;  %v781_v27 = vrot.slane %v780_v18, 2  ;;  %v979_v28 = vsel %vm31_vm0, %v1497_v15, 0.0  ;;  %v1445_v14 = vld [vmem:[%s2063_s0 + $0x1b8] sm:$0x7f] }
  0x8a   :  { %v639_v29 = vadd.f32 %v638_v20, %v637_v12  ;;  %v694_v30 = vrot.slane %v693_v21, 1  ;;  %v837_v31 = vrot.slane %v836_v22, 2  ;;  %v925_v32 = vadd.f32 %v924_v23, %v923_v19  ;;  %v1453_v23 = vld [vmem:[%s2063_s0 + $0x1f8] sm:$0x7f] }
  0x8b   :  { %v590_v34 = vadd.f32 %v550_v25, %v445_v11  ;;  %v782_v35 = vadd.f32 %v781_v27, %v780_v18  ;;  %v980_v36 = vrot.slane %v979_v28, 4  ;;  %v81_v37 = vsel %vm31_vm0, %v22_v24, 0.0 }
  0x8c   :  { %v695_v38 = vadd.f32 %v694_v30, %v693_v21  ;;  %v727_v39 = vadd.f32 %v639_v29, %v582_v26  ;;  %v838_v40 = vadd.f32 %v837_v31, %v836_v22  ;;  %v926_v41 = vrot.slane %v925_v32, 2 }
  0x8d   :  { %v783_v43 = vrot.slane %v782_v35, 1  ;;  %v981_v44 = vadd.f32 %v980_v36, %v979_v28  ;;  %v82_v45 = vrot.slane %v81_v37, 4  ;;  %v137_v46 = vsel %vm31_vm0, %v30_v33, 0.0  ;;  %v1469_v33 = vld [vmem:[%s2063_s0 + $0x278] sm:$0x7f] }
  0x8e   :  { %v735_v47 = vadd.f32 %v695_v38, %v590_v34  ;;  %v839_v48 = vrot.slane %v838_v40, 1  ;;  %v927_v49 = vadd.f32 %v926_v41, %v925_v32  ;;  %v138_v50 = vrot.slane %v137_v46, 4  ;;  %v1461_v32 = vld [vmem:[%s2063_s0 + $0x238] sm:$0x7f] }
  0x8f   :  { %v784_v52 = vadd.f32 %v783_v43, %v782_v35  ;;  %v982_v53 = vrot.slane %v981_v44, 2  ;;  %v83_v54 = vadd.f32 %v82_v45, %v81_v37  ;;  %v226_v55 = vsel %vm31_vm0, %v1413_v42, 0.0 }
  0x90   :  { %v840_v56 = vadd.f32 %v839_v48, %v838_v40  ;;  %v928_v57 = vrot.slane %v927_v49, 1  ;;  %v139_v58 = vadd.f32 %v138_v50, %v137_v46  ;;  %v227_v59 = vrot.slane %v226_v55, 4  ;;  %v1477_v46 = vld [vmem:[%s2063_s0 + $0x2b8] sm:$0x7f] }
  0x91   :  { %v872_v61 = vadd.f32 %v784_v52, %v727_v39  ;;  %v983_v62 = vadd.f32 %v982_v53, %v981_v44  ;;  %v84_v63 = vrot.slane %v83_v54, 2  ;;  %v282_v0 = vsel %vm31_vm0, %v1421_v51, 0.0 }
  0x92   :  { %v880_v1 = vadd.f32 %v840_v56, %v735_v47  ;;  %v929_v2 = vadd.f32 %v928_v57, %v927_v49  ;;  %v140_v3 = vrot.slane %v139_v58, 2  ;;  %v228_v4 = vadd.f32 %v227_v59, %v226_v55 }
  0x93   :  { %v984_v6 = vrot.slane %v983_v62, 1  ;;  %v85_v7 = vadd.f32 %v84_v63, %v83_v54  ;;  %v283_v8 = vrot.slane %v282_v0, 4  ;;  %v371_v9 = vsel %vm31_vm0, %v1429_v60, 0.0 }
  0x94   :  { %v1017_v10 = vadd.f32 %v929_v2, %v872_v61  ;;  %v141_v11 = vadd.f32 %v140_v3, %v139_v58  ;;  %v229_v12 = vrot.slane %v228_v4, 2  ;;  %v372_v13 = vrot.slane %v371_v9, 4  ;;  %v1485_v58 = vld [vmem:[%s2063_s0 + $0x2f8] sm:$0x7f] }
  0x95   :  { %v985_v15 = vadd.f32 %v984_v6, %v983_v62  ;;  %v86_v16 = vrot.slane %v85_v7, 1  ;;  %v284_v17 = vadd.f32 %v283_v8, %v282_v0  ;;  %v427_v18 = vsel %vm31_vm0, %v1437_v5, 0.0 }
  0x96   :  { %v142_v19 = vrot.slane %v141_v11, 1  ;;  %v230_v20 = vadd.f32 %v229_v12, %v228_v4  ;;  %v373_v21 = vadd.f32 %v372_v13, %v371_v9  ;;  %v428_v22 = vrot.slane %v427_v18, 4  ;;  %v1493_v4 = vld [vmem:[%s2063_s0 + $0x338] sm:$0x7f] }
  0x97   :  { %v1025_v24 = vadd.f32 %v985_v15, %v880_v1  ;;  %v87_v25 = vadd.f32 %v86_v16, %v85_v7  ;;  %v285_v26 = vrot.slane %v284_v17, 2  ;;  %v516_v27 = vsel %vm31_vm0, %v1445_v14, 0.0  ;;  %v1501_v13 = vld [vmem:[%s2063_s0 + $0x378] sm:$0x7f] }
  0x98   :  { %v143_v28 = vadd.f32 %v142_v19, %v141_v11  ;;  %v231_v29 = vrot.slane %v230_v20, 1  ;;  %v374_v30 = vrot.slane %v373_v21, 2  ;;  %v429_v31 = vadd.f32 %v428_v22, %v427_v18  ;;  %v17_v22 = vld [vmem:[%s2063_s0 + $0x10] sm:$0x7f] }
  0x99   :  { %v1063_v34 = vsel %vm1059_vm1, %v1025_v24, %v1017_v10  ;;  %v286_v35 = vadd.f32 %v285_v26, %v284_v17  ;;  %v517_v36 = vrot.slane %v516_v27, 4  ;;  %v572_v37 = vsel %vm31_vm0, %v1453_v23, 0.0 }
  0x9a   :  { %1210 = vmatprep.mubr.f32.mxu1 %v1063_v34  ;;  %v232_v38 = vadd.f32 %v231_v29, %v230_v20  ;;  %v375_v39 = vadd.f32 %v374_v30, %v373_v21  ;;  %v430_v40 = vrot.slane %v429_v31, 2  ;;  %v573_v41 = vrot.slane %v572_v37, 4 }
  0x9b   :  { %v287_v42 = vrot.slane %v286_v35, 1  ;;  %v518_v43 = vadd.f32 %v517_v36, %v516_v27  ;;  %v661_v44 = vsel %vm31_vm0, %v1461_v32, 0.0  ;;  %v717_v45 = vsel %vm31_vm0, %v1469_v33, 0.0  ;;  %v1408_v36 = vld [vmem:[%s2063_s0 + $0x90] sm:$0x7f] }
  0x9c   :  { %v296_v47 = vadd.f32 %v232_v38, %v87_v25  ;;  %v376_v48 = vrot.slane %v375_v39, 1  ;;  %v431_v49 = vadd.f32 %v430_v40, %v429_v31  ;;  %v574_v50 = vadd.f32 %v573_v41, %v572_v37  ;;  %v25_v31 = vld [vmem:[%s2063_s0 + $0x50] sm:$0x7f] }
  0x9d   :  { %v288_v51 = vadd.f32 %v287_v42, %v286_v35  ;;  %v519_v52 = vrot.slane %v518_v43, 2  ;;  %v662_v53 = vrot.slane %v661_v44, 4  ;;  %v718_v54 = vrot.slane %v717_v45, 4  ;;  %v1416_v41 = vld [vmem:[%s2063_s0 + $0xd0] sm:$0x7f] }
  0x9e   :  { %v377_v55 = vadd.f32 %v376_v48, %v375_v39  ;;  %v432_v56 = vrot.slane %v431_v49, 1  ;;  %v575_v57 = vrot.slane %v574_v50, 2  ;;  %v806_v59 = vsel %vm31_vm0, %v1477_v46, 0.0 }
  0x9f   :  { %v304_v60 = vadd.f32 %v288_v51, %v143_v28  ;;  %v520_v61 = vadd.f32 %v519_v52, %v518_v43  ;;  %v663_v62 = vadd.f32 %v662_v53, %v661_v44  ;;  %v719_v63 = vadd.f32 %v718_v54, %v717_v45  ;;  %v1424_v54 = vld [vmem:[%s2063_s0 + $0x110] sm:$0x7f] }
  0xa0   :  { %v433_v0 = vadd.f32 %v432_v56, %v431_v49  ;;  %v441_v1 = vadd.f32 %v377_v55, %v296_v47  ;;  %v576_v2 = vadd.f32 %v575_v57, %v574_v50  ;;  %v807_v3 = vrot.slane %v806_v59, 4 }
  0xa1   :  { %v521_v5 = vrot.slane %v520_v61, 1  ;;  %v664_v6 = vrot.slane %v663_v62, 2  ;;  %v720_v7 = vrot.slane %v719_v63, 2  ;;  %v862_v8 = vsel %vm31_vm0, %v1485_v58, 0.0 }
  0xa2   :  { %v449_v9 = vadd.f32 %v433_v0, %v304_v60  ;;  %v577_v10 = vrot.slane %v576_v2, 1  ;;  %v808_v11 = vadd.f32 %v807_v3, %v806_v59  ;;  %v863_v12 = vrot.slane %v862_v8, 4 }
  0xa3   :  { %v522_v14 = vadd.f32 %v521_v5, %v520_v61  ;;  %v665_v15 = vadd.f32 %v664_v6, %v663_v62  ;;  %v721_v16 = vadd.f32 %v720_v7, %v719_v63  ;;  %v951_v17 = vsel %vm31_vm0, %v1493_v4, 0.0  ;;  %v1432_v63 = vld [vmem:[%s2063_s0 + $0x150] sm:$0x7f] }
  0xa4   :  { %v578_v18 = vadd.f32 %v577_v10, %v576_v2  ;;  %v809_v19 = vrot.slane %v808_v11, 2  ;;  %v864_v20 = vadd.f32 %v863_v12, %v862_v8  ;;  %v952_v21 = vrot.slane %v951_v17, 4  ;;  %v1440_v8 = vld [vmem:[%s2063_s0 + $0x190] sm:$0x7f] }
  0xa5   :  { %v586_v23 = vadd.f32 %v522_v14, %v441_v1  ;;  %v666_v24 = vrot.slane %v665_v15, 1  ;;  %v722_v25 = vrot.slane %v721_v16, 1  ;;  %v1007_v26 = vsel %vm31_vm0, %v1501_v13, 0.0 }
  0xa6   :  { %v594_v27 = vadd.f32 %v578_v18, %v449_v9  ;;  %v810_v28 = vadd.f32 %v809_v19, %v808_v11  ;;  %v865_v29 = vrot.slane %v864_v20, 2  ;;  %v953_v30 = vadd.f32 %v952_v21, %v951_v17  ;;  %v1448_v17 = vld [vmem:[%s2063_s0 + $0x1d0] sm:$0x7f] }
  0xa7   :  { %v667_v32 = vadd.f32 %v666_v24, %v665_v15  ;;  %v723_v33 = vadd.f32 %v722_v25, %v721_v16  ;;  %v1008_v34 = vrot.slane %v1007_v26, 4  ;;  %v46_v35 = vsel %vm31_vm0, %v17_v22, 0.0 }
  0xa8   :  { %v811_v37 = vrot.slane %v810_v28, 1  ;;  %v866_v38 = vadd.f32 %v865_v29, %v864_v20  ;;  %v954_v39 = vrot.slane %v953_v30, 2  ;;  %v47_v40 = vrot.slane %v46_v35, 4 }
  0xa9   :  { %v731_v42 = vadd.f32 %v667_v32, %v586_v23  ;;  %v739_v43 = vadd.f32 %v723_v33, %v594_v27  ;;  %v1009_v44 = vadd.f32 %v1008_v34, %v1007_v26  ;;  %v102_v45 = vsel %vm31_vm0, %v25_v31, 0.0  ;;  %v1456_v26 = vld [vmem:[%s2063_s0 + $0x210] sm:$0x7f] }
  0xaa   :  { %v812_v46 = vadd.f32 %v811_v37, %v810_v28  ;;  %v867_v47 = vrot.slane %v866_v38, 1  ;;  %v955_v48 = vadd.f32 %v954_v39, %v953_v30  ;;  %v48_v49 = vadd.f32 %v47_v40, %v46_v35  ;;  %v1464_v31 = vld [vmem:[%s2063_s0 + $0x250] sm:$0x7f] }
  0xab   :  { %v1010_v50 = vrot.slane %v1009_v44, 2  ;;  %v103_v51 = vrot.slane %v102_v45, 4  ;;  %v191_v52 = vsel %vm31_vm0, %v1408_v36, 0.0  ;;  %v247_v53 = vsel %vm31_vm0, %v1416_v41, 0.0 }
  0xac   :  { %v868_v55 = vadd.f32 %v867_v47, %v866_v38  ;;  %v876_v56 = vadd.f32 %v812_v46, %v731_v42  ;;  %v956_v57 = vrot.slane %v955_v48, 1  ;;  %v49_v58 = vrot.slane %v48_v49, 2 }
  0xad   :  { %v1011_v59 = vadd.f32 %v1010_v50, %v1009_v44  ;;  %v104_v60 = vadd.f32 %v103_v51, %v102_v45  ;;  %v192_v61 = vrot.slane %v191_v52, 4  ;;  %v248_v62 = vrot.slane %v247_v53, 4 }
  0xae   :  { %v884_v0 = vadd.f32 %v868_v55, %v739_v43  ;;  %v957_v1 = vadd.f32 %v956_v57, %v955_v48  ;;  %v50_v2 = vadd.f32 %v49_v58, %v48_v49  ;;  %v336_v3 = vsel %vm31_vm0, %v1424_v54, 0.0  ;;  %v1472_v48 = vld [vmem:[%s2063_s0 + $0x290] sm:$0x7f] }
  0xaf   :  { %v1012_v4 = vrot.slane %v1011_v59, 1  ;;  %v105_v5 = vrot.slane %v104_v60, 2  ;;  %v193_v6 = vadd.f32 %v192_v61, %v191_v52  ;;  %v249_v7 = vadd.f32 %v248_v62, %v247_v53  ;;  %v1480_v49 = vld [vmem:[%s2063_s0 + $0x2d0] sm:$0x7f] }
  0xb0   :  { %v1021_v9 = vadd.f32 %v957_v1, %v876_v56  ;;  %v51_v10 = vrot.slane %v50_v2, 1  ;;  %v337_v11 = vrot.slane %v336_v3, 4  ;;  %v392_v12 = vsel %vm31_vm0, %v1432_v63, 0.0  ;;  %v1488_v62 = vld [vmem:[%s2063_s0 + $0x310] sm:$0x7f] }
  0xb1   :  { %v1013_v13 = vadd.f32 %v1012_v4, %v1011_v59  ;;  %v106_v14 = vadd.f32 %v105_v5, %v104_v60  ;;  %v194_v15 = vrot.slane %v193_v6, 2  ;;  %v250_v16 = vrot.slane %v249_v7, 2 }
  0xb2   :  { %v52_v18 = vadd.f32 %v51_v10, %v50_v2  ;;  %v338_v19 = vadd.f32 %v337_v11, %v336_v3  ;;  %v393_v20 = vrot.slane %v392_v12, 4  ;;  %v481_v21 = vsel %vm31_vm0, %v1440_v8, 0.0 }
  0xb3   :  { %v1029_v22 = vadd.f32 %v1013_v13, %v884_v0  ;;  %v107_v23 = vrot.slane %v106_v14, 1  ;;  %v195_v24 = vadd.f32 %v194_v15, %v193_v6  ;;  %v251_v25 = vadd.f32 %v250_v16, %v249_v7  ;;  %v1496_v7 = vld [vmem:[%s2063_s0 + $0x350] sm:$0x7f] }
  0xb4   :  { %v339_v27 = vrot.slane %v338_v19, 2  ;;  %v394_v28 = vadd.f32 %v393_v20, %v392_v12  ;;  %v482_v29 = vrot.slane %v481_v21, 4  ;;  %v537_v30 = vsel %vm31_vm0, %v1448_v17, 0.0  ;;  %v21_v16 = vld [vmem:[%s2063_s0 + $0x30] sm:$0x7f] }
  0xb5   :  { %v1067_v32 = vsel %vm1059_vm1, %v1029_v22, %v1021_v9  ;;  %v108_v33 = vadd.f32 %v107_v23, %v106_v14  ;;  %v196_v34 = vrot.slane %v195_v24, 1  ;;  %v252_v35 = vrot.slane %v251_v25, 1 }
  0xb6   :  { %1350 = vmatprep.mubr.f32.mxu0 %v1067_v32  ;;  %v340_v36 = vadd.f32 %v339_v27, %v338_v19  ;;  %v395_v37 = vrot.slane %v394_v28, 2  ;;  %v483_v38 = vadd.f32 %v482_v29, %v481_v21  ;;  %v538_v39 = vrot.slane %v537_v30, 4 }
  0xb7   :  { %v197_v40 = vadd.f32 %v196_v34, %v195_v24  ;;  %v253_v41 = vadd.f32 %v252_v35, %v251_v25  ;;  %v626_v42 = vsel %vm31_vm0, %v1456_v26, 0.0  ;;  %v682_v43 = vsel %vm31_vm0, %v1464_v31, 0.0  ;;  %v29_v25 = vld [vmem:[%s2063_s0 + $0x70] sm:$0x7f] }
  0xb8   :  { %v341_v44 = vrot.slane %v340_v36, 1  ;;  %v396_v45 = vadd.f32 %v395_v37, %v394_v28  ;;  %v484_v46 = vrot.slane %v483_v38, 2  ;;  %v539_v47 = vadd.f32 %v538_v39, %v537_v30  ;;  %v1412_v34 = vld [vmem:[%s2063_s0 + $0xb0] sm:$0x7f] }
  0xb9   :  { %v291_v50 = vadd.f32 %v197_v40, %v52_v18  ;;  %v299_v51 = vadd.f32 %v253_v41, %v108_v33  ;;  %v627_v52 = vrot.slane %v626_v42, 4  ;;  %v683_v53 = vrot.slane %v682_v43, 4  ;;  %v1420_v39 = vld [vmem:[%s2063_s0 + $0xf0] sm:$0x7f] }
  0xba   :  { %v342_v54 = vadd.f32 %v341_v44, %v340_v36  ;;  %v397_v55 = vrot.slane %v396_v45, 1  ;;  %v485_v56 = vadd.f32 %v484_v46, %v483_v38  ;;  %v540_v57 = vrot.slane %v539_v47, 2 }
  0xbb   :  { %v628_v58 = vadd.f32 %v627_v52, %v626_v42  ;;  %v684_v59 = vadd.f32 %v683_v53, %v682_v43  ;;  %v771_v60 = vsel %vm31_vm0, %v1472_v48, 0.0  ;;  %v827_v61 = vsel %vm31_vm0, %v1480_v49, 0.0 }
  0xbc   :  { %v398_v63 = vadd.f32 %v397_v55, %v396_v45  ;;  %v436_v0 = vadd.f32 %v342_v54, %v291_v50  ;;  %v486_v1 = vrot.slane %v485_v56, 1  ;;  %v541_v2 = vadd.f32 %v540_v57, %v539_v47  ;;  %v1436_v57 = vld [vmem:[%s2063_s0 + $0x170] sm:$0x7f] }
  0xbd   :  { %v629_v3 = vrot.slane %v628_v58, 2  ;;  %v685_v4 = vrot.slane %v684_v59, 2  ;;  %v772_v5 = vrot.slane %v771_v60, 4  ;;  %v828_v6 = vrot.slane %v827_v61, 4 }
  0xbe   :  { %v444_v8 = vadd.f32 %v398_v63, %v299_v51  ;;  %v487_v9 = vadd.f32 %v486_v1, %v485_v56  ;;  %v542_v10 = vrot.slane %v541_v2, 1  ;;  %v916_v11 = vsel %vm31_vm0, %v1488_v62, 0.0  ;;  %v1428_v56 = vld [vmem:[%s2063_s0 + $0x130] sm:$0x7f] }
  0xbf   :  { %v630_v12 = vadd.f32 %v629_v3, %v628_v58  ;;  %v686_v13 = vadd.f32 %v685_v4, %v684_v59  ;;  %v773_v14 = vadd.f32 %v772_v5, %v771_v60  ;;  %v829_v15 = vadd.f32 %v828_v6, %v827_v61  ;;  %v1444_v6 = vld [vmem:[%s2063_s0 + $0x1b0] sm:$0x7f] }
  0xc0   :  { %v543_v17 = vadd.f32 %v542_v10, %v541_v2  ;;  %v581_v18 = vadd.f32 %v487_v9, %v436_v0  ;;  %v917_v19 = vrot.slane %v916_v11, 4  ;;  %v972_v20 = vsel %vm31_vm0, %v1496_v7, 0.0 }
  0xc1   :  { %v631_v21 = vrot.slane %v630_v12, 1  ;;  %v687_v22 = vrot.slane %v686_v13, 1  ;;  %v774_v23 = vrot.slane %v773_v14, 2  ;;  %v830_v24 = vrot.slane %v829_v15, 2 }
  0xc2   :  { %v589_v26 = vadd.f32 %v543_v17, %v444_v8  ;;  %v918_v27 = vadd.f32 %v917_v19, %v916_v11  ;;  %v973_v28 = vrot.slane %v972_v20, 4  ;;  %v74_v29 = vsel %vm31_vm0, %v21_v16, 0.0 }
  0xc3   :  { %v632_v30 = vadd.f32 %v631_v21, %v630_v12  ;;  %v688_v31 = vadd.f32 %v687_v22, %v686_v13  ;;  %v775_v32 = vadd.f32 %v774_v23, %v773_v14  ;;  %v831_v33 = vadd.f32 %v830_v24, %v829_v15  ;;  %v1452_v15 = vld [vmem:[%s2063_s0 + $0x1f0] sm:$0x7f] }
  0xc4   :  { %v919_v35 = vrot.slane %v918_v27, 2  ;;  %v974_v36 = vadd.f32 %v973_v28, %v972_v20  ;;  %v75_v37 = vrot.slane %v74_v29, 4  ;;  %v130_v38 = vsel %vm31_vm0, %v29_v25, 0.0  ;;  %v1460_v24 = vld [vmem:[%s2063_s0 + $0x230] sm:$0x7f] }
  0xc5   :  { %v726_v40 = vadd.f32 %v632_v30, %v581_v18  ;;  %v734_v41 = vadd.f32 %v688_v31, %v589_v26  ;;  %v776_v42 = vrot.slane %v775_v32, 1  ;;  %v832_v43 = vrot.slane %v831_v33, 1  ;;  %v1468_v25 = vld [vmem:[%s2063_s0 + $0x270] sm:$0x7f] }
  0xc6   :  { %v920_v44 = vadd.f32 %v919_v35, %v918_v27  ;;  %v975_v45 = vrot.slane %v974_v36, 2  ;;  %v76_v46 = vadd.f32 %v75_v37, %v74_v29  ;;  %v131_v47 = vrot.slane %v130_v38, 4 }
  0xc7   :  { %v777_v48 = vadd.f32 %v776_v42, %v775_v32  ;;  %v833_v49 = vadd.f32 %v832_v43, %v831_v33  ;;  %v219_v50 = vsel %vm31_vm0, %v1412_v34, 0.0  ;;  %v275_v51 = vsel %vm31_vm0, %v1420_v39, 0.0  ;;  %v1476_v42 = vld [vmem:[%s2063_s0 + $0x2b0] sm:$0x7f] }
  0xc8   :  { %v921_v52 = vrot.slane %v920_v44, 1  ;;  %v976_v53 = vadd.f32 %v975_v45, %v974_v36  ;;  %v77_v54 = vrot.slane %v76_v46, 2  ;;  %v132_v55 = vadd.f32 %v131_v47, %v130_v38  ;;  %v1484_v47 = vld [vmem:[%s2063_s0 + $0x2f0] sm:$0x7f] }
  0xc9   :  { %v871_v58 = vadd.f32 %v777_v48, %v726_v40  ;;  %v879_v59 = vadd.f32 %v833_v49, %v734_v41  ;;  %v220_v60 = vrot.slane %v219_v50, 4  ;;  %v276_v61 = vrot.slane %v275_v51, 4 }
  0xca   :  { %v922_v62 = vadd.f32 %v921_v52, %v920_v44  ;;  %v977_v63 = vrot.slane %v976_v53, 1  ;;  %v78_v0 = vadd.f32 %v77_v54, %v76_v46  ;;  %v133_v1 = vrot.slane %v132_v55, 2 }
  0xcb   :  { %v221_v2 = vadd.f32 %v220_v60, %v219_v50  ;;  %v277_v3 = vadd.f32 %v276_v61, %v275_v51  ;;  %v364_v4 = vsel %vm31_vm0, %v1428_v56, 0.0  ;;  %v420_v5 = vsel %vm31_vm0, %v1436_v57, 0.0  ;;  %v1492_v60 = vld [vmem:[%s2063_s0 + $0x330] sm:$0x7f] }
  0xcc   :  { %v978_v7 = vadd.f32 %v977_v63, %v976_v53  ;;  %v1016_v8 = vadd.f32 %v922_v62, %v871_v58  ;;  %v79_v9 = vrot.slane %v78_v0, 1  ;;  %v134_v10 = vadd.f32 %v133_v1, %v132_v55  ;;  %v1500_v1 = vld [vmem:[%s2063_s0 + $0x370] sm:$0x7f] }
  0xcd   :  { %v222_v11 = vrot.slane %v221_v2, 2  ;;  %v278_v12 = vrot.slane %v277_v3, 2  ;;  %v365_v13 = vrot.slane %v364_v4, 4  ;;  %v421_v14 = vrot.slane %v420_v5, 4 }
  0xce   :  { %v1024_v16 = vadd.f32 %v978_v7, %v879_v59  ;;  %v80_v17 = vadd.f32 %v79_v9, %v78_v0  ;;  %v135_v18 = vrot.slane %v134_v10, 1  ;;  %v509_v19 = vsel %vm31_vm0, %v1444_v6, 0.0 }
  0xcf   :  { %v223_v20 = vadd.f32 %v222_v11, %v221_v2  ;;  %v279_v21 = vadd.f32 %v278_v12, %v277_v3  ;;  %v366_v22 = vadd.f32 %v365_v13, %v364_v4  ;;  %v422_v23 = vadd.f32 %v421_v14, %v420_v5 }
  0xd0   :  { %v1062_v26 = vsel %vm1059_vm1, %v1024_v16, %v1016_v8  ;;  %v136_v27 = vadd.f32 %v135_v18, %v134_v10  ;;  %v510_v28 = vrot.slane %v509_v19, 4  ;;  %v565_v29 = vsel %vm31_vm0, %v1452_v15, 0.0 }
  0xd1   :  { %1211 = vmatmul.mubr.f32.vlgmr.msra.gmra.mrb[0].mxu1 %v1062_v26  ;;  %v224_v30 = vrot.slane %v223_v20, 1  ;;  %v280_v31 = vrot.slane %v279_v21, 1  ;;  %v367_v32 = vrot.slane %v366_v22, 2  ;;  %v423_v33 = vrot.slane %v422_v23, 2 }
  0xd2   :  { %v511_v34 = vadd.f32 %v510_v28, %v509_v19  ;;  %v566_v35 = vrot.slane %v565_v29, 4  ;;  %v654_v36 = vsel %vm31_vm0, %v1460_v24, 0.0  ;;  %v710_v37 = vsel %vm31_vm0, %v1468_v25, 0.0 }
  0xd3   :  { %v225_v38 = vadd.f32 %v224_v30, %v223_v20  ;;  %v281_v39 = vadd.f32 %v280_v31, %v279_v21  ;;  %v368_v40 = vadd.f32 %v367_v32, %v366_v22  ;;  %v424_v41 = vadd.f32 %v423_v33, %v422_v23 }
  0xd4   :  { %v512_v43 = vrot.slane %v511_v34, 2  ;;  %v567_v44 = vadd.f32 %v566_v35, %v565_v29  ;;  %v655_v45 = vrot.slane %v654_v36, 4  ;;  %v711_v46 = vrot.slane %v710_v37, 4 }
  0xd5   :  { %v295_v48 = vadd.f32 %v225_v38, %v80_v17  ;;  %v303_v49 = vadd.f32 %v281_v39, %v136_v27  ;;  %v369_v50 = vrot.slane %v368_v40, 1  ;;  %v425_v51 = vrot.slane %v424_v41, 1 }
  0xd6   :  { %v513_v52 = vadd.f32 %v512_v43, %v511_v34  ;;  %v568_v53 = vrot.slane %v567_v44, 2  ;;  %v656_v54 = vadd.f32 %v655_v45, %v654_v36  ;;  %v712_v55 = vadd.f32 %v711_v46, %v710_v37 }
  0xd7   :  { %v370_v56 = vadd.f32 %v369_v50, %v368_v40  ;;  %v426_v57 = vadd.f32 %v425_v51, %v424_v41  ;;  %v799_v58 = vsel %vm31_vm0, %v1476_v42, 0.0  ;;  %v855_v59 = vsel %vm31_vm0, %v1484_v47, 0.0  ;;  %v1502_v50 = vld [vmem:[%s2065_s2] ss:$0 sm:$0xff] }
  0xd8   :  { %v514_v61 = vrot.slane %v513_v52, 1  ;;  %v569_v62 = vadd.f32 %v568_v53, %v567_v44  ;;  %v657_v63 = vrot.slane %v656_v54, 2  ;;  %v713_v0 = vrot.slane %v712_v55, 2 }
  0xd9   :  { %v440_v2 = vadd.f32 %v370_v56, %v295_v48  ;;  %v448_v3 = vadd.f32 %v426_v57, %v303_v49  ;;  %v800_v4 = vrot.slane %v799_v58, 4  ;;  %v856_v5 = vrot.slane %v855_v59, 4 }
  0xda   :  { %v515_v6 = vadd.f32 %v514_v61, %v513_v52  ;;  %v570_v7 = vrot.slane %v569_v62, 1  ;;  %v658_v8 = vadd.f32 %v657_v63, %v656_v54  ;;  %v714_v9 = vadd.f32 %v713_v0, %v712_v55 }
  0xdb   :  { %v801_v10 = vadd.f32 %v800_v4, %v799_v58  ;;  %v857_v11 = vadd.f32 %v856_v5, %v855_v59  ;;  %v944_v12 = vsel %vm31_vm0, %v1492_v60, 0.0  ;;  %v1000_v13 = vsel %vm31_vm0, %v1500_v1, 0.0 }
  0xdc   :  { %v571_v14 = vadd.f32 %v570_v7, %v569_v62  ;;  %v585_v15 = vadd.f32 %v515_v6, %v440_v2  ;;  %v659_v16 = vrot.slane %v658_v8, 1  ;;  %v715_v17 = vrot.slane %v714_v9, 1 }
  0xdd   :  { %v802_v18 = vrot.slane %v801_v10, 2  ;;  %v858_v19 = vrot.slane %v857_v11, 2  ;;  %v945_v20 = vrot.slane %v944_v12, 4  ;;  %v1001_v21 = vrot.slane %v1000_v13, 4 }
  0xde   :  { %v593_v22 = vadd.f32 %v571_v14, %v448_v3  ;;  %v660_v23 = vadd.f32 %v659_v16, %v658_v8  ;;  %v716_v24 = vadd.f32 %v715_v17, %v714_v9  ;;  %vm1356_vm2 = vcmask 33792  }
  0xdf   :  { %v803_v25 = vadd.f32 %v802_v18, %v801_v10  ;;  %v859_v26 = vadd.f32 %v858_v19, %v857_v11  ;;  %v946_v27 = vadd.f32 %v945_v20, %v944_v12  ;;  %v1002_v28 = vadd.f32 %v1001_v21, %v1000_v13  ;;  %v1503_v11 = vld [vmem:[%s2065_s2 + $0x1] ss:$0 sm:$0xff]  ;;  %v1504_v13 = vld [vmem:[%s2065_s2 + $0x2] ss:$0 sm:$0xff] }
  0xe0   :  { %v730_v29 = vadd.f32 %v660_v23, %v585_v15  ;;  %v738_v30 = vadd.f32 %v716_v24, %v593_v22 }
  0xe1   :  { %v804_v31 = vrot.slane %v803_v25, 1  ;;  %v860_v32 = vrot.slane %v859_v26, 1  ;;  %v947_v33 = vrot.slane %v946_v27, 2  ;;  %v1003_v34 = vrot.slane %v1002_v28, 2 }
  0xe3   :  { %v805_v35 = vadd.f32 %v804_v31, %v803_v25  ;;  %v861_v36 = vadd.f32 %v860_v32, %v859_v26  ;;  %v948_v37 = vadd.f32 %v947_v33, %v946_v27  ;;  %v1004_v38 = vadd.f32 %v1003_v34, %v1002_v28 }
  0xe5   :  { %v875_v39 = vadd.f32 %v805_v35, %v730_v29  ;;  %v883_v40 = vadd.f32 %v861_v36, %v738_v30  ;;  %v949_v41 = vrot.slane %v948_v37, 1  ;;  %v1005_v42 = vrot.slane %v1004_v38, 1 }
  0xe7   :  { %v950_v43 = vadd.f32 %v949_v41, %v948_v37  ;;  %v1006_v44 = vadd.f32 %v1005_v42, %v1004_v38 }
  0xe9   :  { %v1020_v45 = vadd.f32 %v950_v43, %v875_v39  ;;  %v1028_v46 = vadd.f32 %v1006_v44, %v883_v40 }
  0xeb   :  { %v1066_v47 = vsel %vm1059_vm1, %v1028_v46, %v1020_v45 }
  0xec   :  { %1351 = vmatmul.mubr.f32.vlgmr.msra.gmra.mrb[0].mxu0 %v1066_v47 }
 0x1a4   :  { %v1212_v48 = vpop.f32.mrb[0].mxu1 }
 0x1a5   :  { %v1214_v49 = vpop.f32.mrb[1].mxu1  ;;  %v1505_v51 = vadd.f32 %v1502_v50, %v1212_v48 }
 0x1bf   :  { %v1352_v52 = vpop.f32.mrb[0].mxu0 }
 0x1c0   :  { %v1506_v53 = vadd.f32 %v1505_v51, %v1352_v52  ;;  %v1354_v54 = vpop.f32.mrb[1].mxu0 }
 0x1c2   :  { %v1357_v55 = vsel %vm1356_vm2, %v1506_v53, 0.0 }
 0x1c3   :  { %v1358_v56 = vrot.slane %v1357_v55, 4 }
 0x1c5   :  { %v1359_v57 = vadd.f32 %v1358_v56, %v1357_v55 }
 0x1c7   :  { %v1360_v58 = vrot.slane %v1359_v57, 2 }
 0x1c9   :  { %v1361_v59 = vadd.f32 %v1360_v58, %v1359_v57 }
 0x1cb   :  { %v1362_v60 = vrot.slane %v1361_v59, 1 }
 0x1cd   :  { %v1363_v61 = vadd.f32 %v1362_v60, %v1361_v59 }
 0x1cf   :  { %v1365_v62 = vmul.f32 0.5, %v1363_v61 }
 0x1d1   :  { %v1366_v63 = vsub.f32 %v1506_v53, %v1365_v62 }
 0x1d3   :  { %v1367_v0 = vmul.f32 %v1366_v63, %v1366_v63 }
 0x1d5   :  { %v1368_v1 = vsel %vm1356_vm2, %v1367_v0, 0.0 }
 0x1d6   :  { %v1369_v2 = vrot.slane %v1368_v1, 4 }
 0x1d8   :  { %v1370_v3 = vadd.f32 %v1369_v2, %v1368_v1 }
 0x1da   :  { %v1371_v4 = vrot.slane %v1370_v3, 2 }
 0x1dc   :  { %v1372_v5 = vadd.f32 %v1371_v4, %v1370_v3 }
 0x1de   :  { %v1373_v6 = vrot.slane %v1372_v5, 1 }
 0x1e0   :  { %v1374_v7 = vadd.f32 %v1373_v6, %v1372_v5 }
 0x1e2   :  { %v1375_v8 = vmul.f32 0.5, %v1374_v7 }
 0x1e4   :  { %v1376_v9 = vadd.f32 1e-05, %v1375_v8 }
 0x1e6   :  { %1512 = vrsqrt.f32 %v1376_v9 }
 0x1f0   :  { %v1513_v10 = vpop.eup %1512 }
 0x1f1   :  { %v1378_v12 = vmul.f32 %v1513_v10, %v1366_v63 }
 0x1f3   :  { %v1384_v14 = vmul.f32 %v1503_v11, %v1378_v12 }
 0x1f5   :  { %v1390_v15 = vadd.f32 %v1504_v13, %v1384_v14 }
 0x1f7   :  { %1391 = vst.msk [vmem:[#allocation2] sm:$0x3] %vm1356_vm2, %v1390_v15 }
 0x1f8   :  { %1525 = shalt.err (!%p1522_p4)
}
 0x1f9   :  { %s1526_s15 = scalar_lea.hbm %s2066_s3, 32 }
 0x1fa   :  { %p1527_p5 = scmp.ne.s32.totalorder %s2066_s3, %s1526_s15  ;;  %p1530_p6 = scmp.lt.u32.totalorder %s1526_s15, %s2066_s3 }
 0x1fc   :  { %p1532_p7 = pnand %p1530_p6, %p1527_p5 }
 0x1fe   :  { %1535 = shalt.err (!%p1532_p7)
}
 0x1ff   :  { %1401 = dma.vmem_to_hbm [thread:$0]  %s1399_s11, 32, %s2066_s3, [#allocation3]  }
 0x200   :  { %1536 = dma.done.wait [#allocation3], 32  }
 0x201   :  { %1537 = vsyncadd [#allocation3], 4294967264 }
 0x202   :  { %1405 = vsyncpa [#allocation3], 1 }

</bundles_post_ra>
